<compile_context>
chip_gen: v7x
topology: tpu7x:2x2x1
jax: 0.10.0
libtpu: 0.0.40
codegen_flags: <defaults>
</compile_context>

<pallas_src>
import jax
import jax.numpy as jnp
from jax import lax
from jax.experimental import pallas as pl
from jax.experimental.pallas import tpu as pltpu


def _blstm_kernel(x_ref, len_ref, valid_ref, h0_ref, c0_ref,
                  wih_cat_ref, b_cat_ref,
                  whh_f_ref, whh_b_ref,
                  wout_f_ref, wout_b_ref, bout_ref,
                  out_ref,
                  xg_sc, hid_f_sc, hid_b_sc):
    TB, _ = x_ref.shape                 # TB = T * Bp rows (row r = t*Bp + b)
    Bp = len_ref.shape[0]
    T = TB // Bp
    H = whh_f_ref.shape[0]
    H3, H4 = 3 * H, 4 * H

    # ---- hoisted input projection: one bulk (T*Bp, D) x (D, 8H) matmul ----
    # columns [0:4H] = forward gates, [4H:8H] = reverse gates; bias folded in.
    xg_sc[...] = (jnp.dot(x_ref[...], wih_cat_ref[...],
                          preferred_element_type=jnp.float32)
                  + b_cat_ref[...])

    # ---- loop-invariant reads (stay register/VMEM resident in the loops) ----
    whh_f = whh_f_ref[...]
    whh_b = whh_b_ref[...]
    len_v = len_ref[...]                # (Bp, 1) int32

    def cell(xg_t, h_prev, c_prev, whh):
        gates = xg_t + jnp.dot(h_prev, whh, preferred_element_type=jnp.float32)
        sfo = jax.nn.sigmoid(gates[:, :H3])        # i, f, o in one EUP chain
        g = jnp.tanh(gates[:, H3:])
        c_new = sfo[:, H:2 * H] * c_prev + sfo[:, :H] * g
        h_new = sfo[:, 2 * H:H3] * jnp.tanh(c_new)
        return h_new, c_new

    # ---------------- forward direction ----------------
    def fwd_step(t, carry):
        h_prev, c_prev = carry
        row = pl.multiple_of(t * Bp, Bp)
        xg_t = xg_sc[pl.ds(row, Bp), pl.ds(0, H4)]
        h_new, c_new = cell(xg_t, h_prev, c_prev, whh_f)
        hid_f_sc[pl.ds(row, Bp), :] = h_new        # zeroing applied after loops
        keep = len_v > t                           # (Bp, 1)
        return jnp.where(keep, h_new, h_prev), jnp.where(keep, c_new, c_prev)

    lax.fori_loop(0, T, fwd_step, (h0_ref[0], c0_ref[0]), unroll=True)

    # ------- reverse direction (starts at t = len-1 per sequence) -------
    def bwd_step(s, carry):
        h_prev, c_prev = carry
        t = T - 1 - s
        row = pl.multiple_of(t * Bp, Bp)
        xg_t = xg_sc[pl.ds(row, Bp), pl.ds(H4, H4)]
        h_new, c_new = cell(xg_t, h_prev, c_prev, whh_b)
        hid_b_sc[pl.ds(row, Bp), :] = h_new
        keep = len_v > t
        return jnp.where(keep, h_new, h_prev), jnp.where(keep, c_new, c_prev)

    lax.fori_loop(0, T, bwd_step, (h0_ref[1], c0_ref[1]), unroll=True)

    # ---- pad_packed_sequence zeroing + bulk output projection ----
    # out = [hid_f | hid_b] @ W_out + b  ==  hid_f @ W_out[:H] + hid_b @ W_out[H:] + b
    valid = valid_ref[...]                          # (TB, 1) float {0,1}
    hid_f = hid_f_sc[...] * valid
    hid_b = hid_b_sc[...] * valid
    out_ref[...] = (jnp.dot(hid_f, wout_f_ref[...],
                            preferred_element_type=jnp.float32)
                    + jnp.dot(hid_b, wout_b_ref[...],
                              preferred_element_type=jnp.float32)
                    + bout_ref[...]).astype(out_ref.dtype)


def my_blstm_forward(params, sequence, lengths, h, c):
    """sequence: (B, T, D) batch_first; lengths: (B,); h, c: (2, B, H)."""
    B, T, D = sequence.shape
    H = params['whh_f'].shape[0]
    O = params['wout'].shape[1]

    # Pad batch to a sublane multiple (8) -> all per-timestep row blocks are
    # tile-aligned.  Padded rows have length 0; their outputs are discarded.
    Bp = ((B + 7) // 8) * 8
    pad = Bp - B

    seq_p = jnp.pad(sequence.astype(jnp.float32), ((0, pad), (0, 0), (0, 0)))
    len_p = jnp.pad(lengths.astype(jnp.int32), (0, pad))
    h_p = jnp.pad(h.astype(jnp.float32), ((0, 0), (0, pad), (0, 0)))
    c_p = jnp.pad(c.astype(jnp.float32), ((0, 0), (0, pad), (0, 0)))

    # time-major, flattened to rows r = t*Bp + b
    x2d = jnp.transpose(seq_p, (1, 0, 2)).reshape(T * Bp, D)
    len2d = len_p.reshape(Bp, 1)
    valid2d = (jnp.arange(T, dtype=jnp.int32)[:, None] < len_p[None, :]
               ).astype(jnp.float32).reshape(T * Bp, 1)

    # concatenated input-projection weights (both directions) and split W_out
    wih_cat = jnp.concatenate([params['wih_f'], params['wih_b']], axis=1)  # (D, 8H)
    b_cat = jnp.concatenate([params['b_f'], params['b_b']], axis=1)        # (1, 8H)
    wout_f = params['wout'][:H]
    wout_b = params['wout'][H:]

    vmem = lambda: pl.BlockSpec(memory_space=pltpu.MemorySpace.VMEM)

    out2d = pl.pallas_call(
        _blstm_kernel,
        out_shape=jax.ShapeDtypeStruct((T * Bp, O), jnp.float32),
        in_specs=[vmem() for _ in range(12)],
        out_specs=vmem(),
        scratch_shapes=[
            pltpu.VMEM((T * Bp, 8 * H), jnp.float32),   # hoisted x-projection (both dirs)
            pltpu.VMEM((T * Bp, H), jnp.float32),       # forward hiddens
            pltpu.VMEM((T * Bp, H), jnp.float32),       # reverse hiddens
        ],
    )(x2d, len2d, valid2d, h_p, c_p,
      wih_cat, b_cat,
      params['whh_f'], params['whh_b'],
      wout_f, wout_b, params['bout'])

    return out2d.reshape(T, Bp, O).transpose(1, 0, 2)[:B]          # (B, T, O)


def init_params(key, dim_in, hidden_size, dim_out):
    ks = jax.random.split(key, 10)
    s = 1.0 / float(hidden_size) ** 0.5

    def u(k, shape, scale):
        return jax.random.uniform(k, shape, jnp.float32, -scale, scale)

    # LSTM weights, pre-transposed; gate order within 4H blocks is [i, f, o, g]
    # (permute PyTorch's [i, f, g, o] blocks when importing real checkpoints).
    # combined bias = bias_ih + bias_hh.
    wih_f = u(ks[0], (dim_in, 4 * hidden_size), s)
    whh_f = u(ks[1], (hidden_size, 4 * hidden_size), s)
    b_f = u(ks[2], (1, 4 * hidden_size), s) + u(ks[3], (1, 4 * hidden_size), s)
    wih_b = u(ks[4], (dim_in, 4 * hidden_size), s)
    whh_b = u(ks[5], (hidden_size, 4 * hidden_size), s)
    b_b = u(ks[6], (1, 4 * hidden_size), s) + u(ks[7], (1, 4 * hidden_size), s)

    s2 = 1.0 / float(2 * hidden_size) ** 0.5
    wout = u(ks[8], (2 * hidden_size, dim_out), s2)
    bout = u(ks[9], (1, dim_out), s2)

    return dict(wih_f=wih_f, whh_f=whh_f, b_f=b_f,
                wih_b=wih_b, whh_b=whh_b, b_b=b_b,
                wout=wout, bout=bout)


def _reference_forward(params, sequence, lengths, h, c):
    """Pure-JAX reference (same [i, f, o, g] gate layout)."""
    B, T, D = sequence.shape
    H = params['whh_f'].shape[0]
    prec = lax.Precision.HIGHEST

    def run_dir(wih, whh, b, h0, c0, reverse):
        def step(carry, t):
            h_prev, c_prev = carry
            x_t = sequence[:, t, :]
            gates = (jnp.dot(x_t, wih, precision=prec)
                     + jnp.dot(h_prev, whh, precision=prec) + b[0])
            i = jax.nn.sigmoid(gates[:, :H])
            f = jax.nn.sigmoid(gates[:, H:2 * H])
            o = jax.nn.sigmoid(gates[:, 2 * H:3 * H])
            g = jnp.tanh(gates[:, 3 * H:])
            c_new = f * c_prev + i * g
            h_new = o * jnp.tanh(c_new)
            keep = (lengths > t)[:, None]
            return ((jnp.where(keep, h_new, h_prev),
                     jnp.where(keep, c_new, c_prev)),
                    jnp.where(keep, h_new, 0.0))

        ts = jnp.arange(T)
        ts = ts[::-1] if reverse else ts
        _, outs = lax.scan(step, (h0, c0), ts)
        outs = outs[::-1] if reverse else outs          # (T, B, H)
        return jnp.transpose(outs, (1, 0, 2))           # (B, T, H)

    hf = run_dir(params['wih_f'], params['whh_f'], params['b_f'], h[0], c[0], False)
    hb = run_dir(params['wih_b'], params['whh_b'], params['b_b'], h[1], c[1], True)
    hid = jnp.concatenate([hf, hb], axis=-1)            # (B, T, 2H)
    return jnp.dot(hid, params['wout'], precision=prec) + params['bout'][0]


if __name__ == "__main__":
    B, T, D, H, O = 2, 8, 16, 32, 16   # batch, seq, dim_in, hidden, dim_out

    key = jax.random.PRNGKey(0)
    kx, kp = jax.random.split(key)

    sequence = jax.random.normal(kx, (B, T, D), jnp.float32)
    lengths = jnp.array([8, 5], dtype=jnp.int32)        # sorted descending
    h0 = jnp.zeros((2, B, H), jnp.float32)              # MyBLSTM.init_hidden
    c0 = jnp.zeros((2, B, H), jnp.float32)

    params = init_params(kp, D, H, O)

    out = my_blstm_forward(params, sequence, lengths, h0, c0)
    out = jax.block_until_ready(out)
    assert out.shape == (B, T, O)

    ref = _reference_forward(params, sequence, lengths, h0, c0)
    err = float(jnp.max(jnp.abs(out - ref)))
    assert err < 1e-3, f"max abs err vs reference: {err}"

    print("KERNEL_OK")
</pallas_src>

<mosaic_0001>
module attributes {stable_mosaic.version = 11 : i64} {
  func.func @_blstm_kernel(%arg0: memref<64x16xf32, #tpu.memory_space<vmem>>, %arg1: memref<8x1xi32, #tpu.memory_space<vmem>>, %arg2: memref<64x1xf32, #tpu.memory_space<vmem>>, %arg3: memref<2x8x32xf32, #tpu.memory_space<vmem>>, %arg4: memref<2x8x32xf32, #tpu.memory_space<vmem>>, %arg5: memref<16x256xf32, #tpu.memory_space<vmem>>, %arg6: memref<1x256xf32, #tpu.memory_space<vmem>>, %arg7: memref<32x128xf32, #tpu.memory_space<vmem>>, %arg8: memref<32x128xf32, #tpu.memory_space<vmem>>, %arg9: memref<32x16xf32, #tpu.memory_space<vmem>>, %arg10: memref<32x16xf32, #tpu.memory_space<vmem>>, %arg11: memref<1x16xf32, #tpu.memory_space<vmem>>, %arg12: memref<64x16xf32, #tpu.memory_space<vmem>>, %arg13: memref<64x256xf32, #tpu.memory_space<vmem>>, %arg14: memref<64x32xf32, #tpu.memory_space<vmem>>, %arg15: memref<64x32xf32, #tpu.memory_space<vmem>>) attributes {dimension_semantics = [], scalar_prefetch = 0 : i64, scratch_operands = 3 : i64, tpu.core_type = #tpu.core_type<tc>} {
    %c0 = arith.constant 0 : index
    %c0_0 = arith.constant 0 : index
    %0 = vector.load %arg0[%c0, %c0_0] : memref<64x16xf32, #tpu.memory_space<vmem>>, vector<64x16xf32>
    %c0_1 = arith.constant 0 : index
    %c0_2 = arith.constant 0 : index
    %1 = vector.load %arg5[%c0_1, %c0_2] : memref<16x256xf32, #tpu.memory_space<vmem>>, vector<16x256xf32>
    %cst = arith.constant dense<0.000000e+00> : vector<64x256xf32>
    %2 = tpu.matmul %0, %1, %cst {dimension_numbers = #tpu.dot_dimension_numbers<[1], [0], [0], [1], [0, 0, 1, 1], [], []>} : vector<64x16xf32>, vector<16x256xf32>, vector<64x256xf32> -> vector<64x256xf32>
    %c0_3 = arith.constant 0 : index
    %c0_4 = arith.constant 0 : index
    %3 = vector.load %arg6[%c0_3, %c0_4] : memref<1x256xf32, #tpu.memory_space<vmem>>, vector<1x256xf32>
    %4 = vector.broadcast %3 : vector<1x256xf32> to vector<64x256xf32>
    %5 = arith.addf %2, %4 : vector<64x256xf32>
    %c0_5 = arith.constant 0 : index
    %c0_6 = arith.constant 0 : index
    %6 = vector.load %arg13[%c0_5, %c0_6] : memref<64x256xf32, #tpu.memory_space<vmem>>, vector<64x256xf32>
    tpu.vector_store %arg13[%c0_5, %c0_6], %5 {strides = array<i32>} : memref<64x256xf32, #tpu.memory_space<vmem>>, vector<64x256xf32>,
    %c0_7 = arith.constant 0 : index
    %c0_8 = arith.constant 0 : index
    %7 = vector.load %arg7[%c0_7, %c0_8] : memref<32x128xf32, #tpu.memory_space<vmem>>, vector<32x128xf32>
    %c0_9 = arith.constant 0 : index
    %c0_10 = arith.constant 0 : index
    %8 = vector.load %arg8[%c0_9, %c0_10] : memref<32x128xf32, #tpu.memory_space<vmem>>, vector<32x128xf32>
    %c0_11 = arith.constant 0 : index
    %c0_12 = arith.constant 0 : index
    %9 = vector.load %arg1[%c0_11, %c0_12] : memref<8x1xi32, #tpu.memory_space<vmem>>, vector<8x1xi32>
    %c0_13 = arith.constant 0 : index
    %c0_14 = arith.constant 0 : index
    %c0_15 = arith.constant 0 : index
    %10 = vector.load %arg3[%c0_13, %c0_14, %c0_15] : memref<2x8x32xf32, #tpu.memory_space<vmem>>, vector<1x8x32xf32>
    %11 = vector.shape_cast %10 : vector<1x8x32xf32> to vector<8x32xf32>
    %c0_16 = arith.constant 0 : index
    %c0_17 = arith.constant 0 : index
    %c0_18 = arith.constant 0 : index
    %12 = vector.load %arg4[%c0_16, %c0_17, %c0_18] : memref<2x8x32xf32, #tpu.memory_space<vmem>>, vector<1x8x32xf32>
    %13 = vector.shape_cast %12 : vector<1x8x32xf32> to vector<8x32xf32>
    %c0_i32 = arith.constant 0 : i32
    %c8_i32 = arith.constant 8 : i32
    %14 = arith.muli %c0_i32, %c8_i32 : i32
    %15 = tpu.assume_multiple %14, 8 : i32
    %16 = arith.index_cast %15 : i32 to index
    %c0_19 = arith.constant 0 : index
    %17 = vector.load %arg13[%16, %c0_19] : memref<64x256xf32, #tpu.memory_space<vmem>>, vector<8x128xf32>
    %cst_20 = arith.constant dense<0.000000e+00> : vector<8x128xf32>
    %18 = tpu.matmul %11, %7, %cst_20 {dimension_numbers = #tpu.dot_dimension_numbers<[1], [0], [0], [1], [0, 0, 1, 1], [], []>} : vector<8x32xf32>, vector<32x128xf32>, vector<8x128xf32> -> vector<8x128xf32>
    %19 = arith.addf %17, %18 : vector<8x128xf32>
    %20 = vector.extract_strided_slice %19 {offsets = [0, 0], sizes = [8, 96], strides = [1, 1]} : vector<8x128xf32> to vector<8x96xf32>
    %21 = arith.negf %20 : vector<8x96xf32>
    %22 = math.exp %21 : vector<8x96xf32>
    %cst_21 = arith.constant 1.000000e+00 : f32
    %23 = vector.broadcast %cst_21 : f32 to vector<8x96xf32>
    %24 = arith.addf %23, %22 : vector<8x96xf32>
    %25 = arith.divf %23, %24 : vector<8x96xf32>
    %26 = vector.extract_strided_slice %19 {offsets = [0, 96], sizes = [8, 32], strides = [1, 1]} : vector<8x128xf32> to vector<8x32xf32>
    %27 = math.tanh %26 : vector<8x32xf32>
    %28 = vector.extract_strided_slice %25 {offsets = [0, 32], sizes = [8, 32], strides = [1, 1]} : vector<8x96xf32> to vector<8x32xf32>
    %29 = arith.mulf %28, %13 : vector<8x32xf32>
    %30 = vector.extract_strided_slice %25 {offsets = [0, 0], sizes = [8, 32], strides = [1, 1]} : vector<8x96xf32> to vector<8x32xf32>
    %31 = arith.mulf %30, %27 : vector<8x32xf32>
    %32 = arith.addf %29, %31 : vector<8x32xf32>
    %33 = vector.extract_strided_slice %25 {offsets = [0, 64], sizes = [8, 32], strides = [1, 1]} : vector<8x96xf32> to vector<8x32xf32>
    %34 = math.tanh %32 : vector<8x32xf32>
    %35 = arith.mulf %33, %34 : vector<8x32xf32>
    %36 = arith.index_cast %15 : i32 to index
    %c0_22 = arith.constant 0 : index
    %37 = vector.load %arg14[%36, %c0_22] : memref<64x32xf32, #tpu.memory_space<vmem>>, vector<8x32xf32>
    tpu.vector_store %arg14[%36, %c0_22], %35 {strides = array<i32>} : memref<64x32xf32, #tpu.memory_space<vmem>>, vector<8x32xf32>,
    %38 = vector.broadcast %c0_i32 : i32 to vector<8x1xi32>
    %39 = arith.cmpi sgt, %9, %38 : vector<8x1xi32>
    %40 = vector.shape_cast %39 : vector<8x1xi1> to vector<8x1xi1>
    %41 = vector.broadcast %40 : vector<8x1xi1> to vector<8x32xi1>
    %42 = arith.select %41, %35, %11 : vector<8x32xi1>, vector<8x32xf32>
    %43 = vector.shape_cast %39 : vector<8x1xi1> to vector<8x1xi1>
    %44 = vector.broadcast %43 : vector<8x1xi1> to vector<8x32xi1>
    %45 = arith.select %44, %32, %13 : vector<8x32xi1>, vector<8x32xf32>
    %c1_i32 = arith.constant 1 : i32
    %c8_i32_23 = arith.constant 8 : i32
    %46 = arith.muli %c1_i32, %c8_i32_23 : i32
    %47 = tpu.assume_multiple %46, 8 : i32
    %48 = arith.index_cast %47 : i32 to index
    %c0_24 = arith.constant 0 : index
    %49 = vector.load %arg13[%48, %c0_24] : memref<64x256xf32, #tpu.memory_space<vmem>>, vector<8x128xf32>
    %cst_25 = arith.constant dense<0.000000e+00> : vector<8x128xf32>
    %50 = tpu.matmul %42, %7, %cst_25 {dimension_numbers = #tpu.dot_dimension_numbers<[1], [0], [0], [1], [0, 0, 1, 1], [], []>} : vector<8x32xf32>, vector<32x128xf32>, vector<8x128xf32> -> vector<8x128xf32>
    %51 = arith.addf %49, %50 : vector<8x128xf32>
    %52 = vector.extract_strided_slice %51 {offsets = [0, 0], sizes = [8, 96], strides = [1, 1]} : vector<8x128xf32> to vector<8x96xf32>
    %53 = arith.negf %52 : vector<8x96xf32>
    %54 = math.exp %53 : vector<8x96xf32>
    %cst_26 = arith.constant 1.000000e+00 : f32
    %55 = vector.broadcast %cst_26 : f32 to vector<8x96xf32>
    %56 = arith.addf %55, %54 : vector<8x96xf32>
    %57 = arith.divf %55, %56 : vector<8x96xf32>
    %58 = vector.extract_strided_slice %51 {offsets = [0, 96], sizes = [8, 32], strides = [1, 1]} : vector<8x128xf32> to vector<8x32xf32>
    %59 = math.tanh %58 : vector<8x32xf32>
    %60 = vector.extract_strided_slice %57 {offsets = [0, 32], sizes = [8, 32], strides = [1, 1]} : vector<8x96xf32> to vector<8x32xf32>
    %61 = arith.mulf %60, %45 : vector<8x32xf32>
    %62 = vector.extract_strided_slice %57 {offsets = [0, 0], sizes = [8, 32], strides = [1, 1]} : vector<8x96xf32> to vector<8x32xf32>
    %63 = arith.mulf %62, %59 : vector<8x32xf32>
    %64 = arith.addf %61, %63 : vector<8x32xf32>
    %65 = vector.extract_strided_slice %57 {offsets = [0, 64], sizes = [8, 32], strides = [1, 1]} : vector<8x96xf32> to vector<8x32xf32>
    %66 = math.tanh %64 : vector<8x32xf32>
    %67 = arith.mulf %65, %66 : vector<8x32xf32>
    %68 = arith.index_cast %47 : i32 to index
    %c0_27 = arith.constant 0 : index
    %69 = vector.load %arg14[%68, %c0_27] : memref<64x32xf32, #tpu.memory_space<vmem>>, vector<8x32xf32>
    tpu.vector_store %arg14[%68, %c0_27], %67 {strides = array<i32>} : memref<64x32xf32, #tpu.memory_space<vmem>>, vector<8x32xf32>,
    %70 = vector.broadcast %c1_i32 : i32 to vector<8x1xi32>
    %71 = arith.cmpi sgt, %9, %70 : vector<8x1xi32>
    %72 = vector.shape_cast %71 : vector<8x1xi1> to vector<8x1xi1>
    %73 = vector.broadcast %72 : vector<8x1xi1> to vector<8x32xi1>
    %74 = arith.select %73, %67, %42 : vector<8x32xi1>, vector<8x32xf32>
    %75 = vector.shape_cast %71 : vector<8x1xi1> to vector<8x1xi1>
    %76 = vector.broadcast %75 : vector<8x1xi1> to vector<8x32xi1>
    %77 = arith.select %76, %64, %45 : vector<8x32xi1>, vector<8x32xf32>
    %c2_i32 = arith.constant 2 : i32
    %c8_i32_28 = arith.constant 8 : i32
    %78 = arith.muli %c2_i32, %c8_i32_28 : i32
    %79 = tpu.assume_multiple %78, 8 : i32
    %80 = arith.index_cast %79 : i32 to index
    %c0_29 = arith.constant 0 : index
    %81 = vector.load %arg13[%80, %c0_29] : memref<64x256xf32, #tpu.memory_space<vmem>>, vector<8x128xf32>
    %cst_30 = arith.constant dense<0.000000e+00> : vector<8x128xf32>
    %82 = tpu.matmul %74, %7, %cst_30 {dimension_numbers = #tpu.dot_dimension_numbers<[1], [0], [0], [1], [0, 0, 1, 1], [], []>} : vector<8x32xf32>, vector<32x128xf32>, vector<8x128xf32> -> vector<8x128xf32>
    %83 = arith.addf %81, %82 : vector<8x128xf32>
    %84 = vector.extract_strided_slice %83 {offsets = [0, 0], sizes = [8, 96], strides = [1, 1]} : vector<8x128xf32> to vector<8x96xf32>
    %85 = arith.negf %84 : vector<8x96xf32>
    %86 = math.exp %85 : vector<8x96xf32>
    %cst_31 = arith.constant 1.000000e+00 : f32
    %87 = vector.broadcast %cst_31 : f32 to vector<8x96xf32>
    %88 = arith.addf %87, %86 : vector<8x96xf32>
    %89 = arith.divf %87, %88 : vector<8x96xf32>
    %90 = vector.extract_strided_slice %83 {offsets = [0, 96], sizes = [8, 32], strides = [1, 1]} : vector<8x128xf32> to vector<8x32xf32>
    %91 = math.tanh %90 : vector<8x32xf32>
    %92 = vector.extract_strided_slice %89 {offsets = [0, 32], sizes = [8, 32], strides = [1, 1]} : vector<8x96xf32> to vector<8x32xf32>
    %93 = arith.mulf %92, %77 : vector<8x32xf32>
    %94 = vector.extract_strided_slice %89 {offsets = [0, 0], sizes = [8, 32], strides = [1, 1]} : vector<8x96xf32> to vector<8x32xf32>
    %95 = arith.mulf %94, %91 : vector<8x32xf32>
    %96 = arith.addf %93, %95 : vector<8x32xf32>
    %97 = vector.extract_strided_slice %89 {offsets = [0, 64], sizes = [8, 32], strides = [1, 1]} : vector<8x96xf32> to vector<8x32xf32>
    %98 = math.tanh %96 : vector<8x32xf32>
    %99 = arith.mulf %97, %98 : vector<8x32xf32>
    %100 = arith.index_cast %79 : i32 to index
    %c0_32 = arith.constant 0 : index
    %101 = vector.load %arg14[%100, %c0_32] : memref<64x32xf32, #tpu.memory_space<vmem>>, vector<8x32xf32>
    tpu.vector_store %arg14[%100, %c0_32], %99 {strides = array<i32>} : memref<64x32xf32, #tpu.memory_space<vmem>>, vector<8x32xf32>,
    %102 = vector.broadcast %c2_i32 : i32 to vector<8x1xi32>
    %103 = arith.cmpi sgt, %9, %102 : vector<8x1xi32>
    %104 = vector.shape_cast %103 : vector<8x1xi1> to vector<8x1xi1>
    %105 = vector.broadcast %104 : vector<8x1xi1> to vector<8x32xi1>
    %106 = arith.select %105, %99, %74 : vector<8x32xi1>, vector<8x32xf32>
    %107 = vector.shape_cast %103 : vector<8x1xi1> to vector<8x1xi1>
    %108 = vector.broadcast %107 : vector<8x1xi1> to vector<8x32xi1>
    %109 = arith.select %108, %96, %77 : vector<8x32xi1>, vector<8x32xf32>
    %c3_i32 = arith.constant 3 : i32
    %c8_i32_33 = arith.constant 8 : i32
    %110 = arith.muli %c3_i32, %c8_i32_33 : i32
    %111 = tpu.assume_multiple %110, 8 : i32
    %112 = arith.index_cast %111 : i32 to index
    %c0_34 = arith.constant 0 : index
    %113 = vector.load %arg13[%112, %c0_34] : memref<64x256xf32, #tpu.memory_space<vmem>>, vector<8x128xf32>
    %cst_35 = arith.constant dense<0.000000e+00> : vector<8x128xf32>
    %114 = tpu.matmul %106, %7, %cst_35 {dimension_numbers = #tpu.dot_dimension_numbers<[1], [0], [0], [1], [0, 0, 1, 1], [], []>} : vector<8x32xf32>, vector<32x128xf32>, vector<8x128xf32> -> vector<8x128xf32>
    %115 = arith.addf %113, %114 : vector<8x128xf32>
    %116 = vector.extract_strided_slice %115 {offsets = [0, 0], sizes = [8, 96], strides = [1, 1]} : vector<8x128xf32> to vector<8x96xf32>
    %117 = arith.negf %116 : vector<8x96xf32>
    %118 = math.exp %117 : vector<8x96xf32>
    %cst_36 = arith.constant 1.000000e+00 : f32
    %119 = vector.broadcast %cst_36 : f32 to vector<8x96xf32>
    %120 = arith.addf %119, %118 : vector<8x96xf32>
    %121 = arith.divf %119, %120 : vector<8x96xf32>
    %122 = vector.extract_strided_slice %115 {offsets = [0, 96], sizes = [8, 32], strides = [1, 1]} : vector<8x128xf32> to vector<8x32xf32>
    %123 = math.tanh %122 : vector<8x32xf32>
    %124 = vector.extract_strided_slice %121 {offsets = [0, 32], sizes = [8, 32], strides = [1, 1]} : vector<8x96xf32> to vector<8x32xf32>
    %125 = arith.mulf %124, %109 : vector<8x32xf32>
    %126 = vector.extract_strided_slice %121 {offsets = [0, 0], sizes = [8, 32], strides = [1, 1]} : vector<8x96xf32> to vector<8x32xf32>
    %127 = arith.mulf %126, %123 : vector<8x32xf32>
    %128 = arith.addf %125, %127 : vector<8x32xf32>
    %129 = vector.extract_strided_slice %121 {offsets = [0, 64], sizes = [8, 32], strides = [1, 1]} : vector<8x96xf32> to vector<8x32xf32>
    %130 = math.tanh %128 : vector<8x32xf32>
    %131 = arith.mulf %129, %130 : vector<8x32xf32>
    %132 = arith.index_cast %111 : i32 to index
    %c0_37 = arith.constant 0 : index
    %133 = vector.load %arg14[%132, %c0_37] : memref<64x32xf32, #tpu.memory_space<vmem>>, vector<8x32xf32>
    tpu.vector_store %arg14[%132, %c0_37], %131 {strides = array<i32>} : memref<64x32xf32, #tpu.memory_space<vmem>>, vector<8x32xf32>,
    %134 = vector.broadcast %c3_i32 : i32 to vector<8x1xi32>
    %135 = arith.cmpi sgt, %9, %134 : vector<8x1xi32>
    %136 = vector.shape_cast %135 : vector<8x1xi1> to vector<8x1xi1>
    %137 = vector.broadcast %136 : vector<8x1xi1> to vector<8x32xi1>
    %138 = arith.select %137, %131, %106 : vector<8x32xi1>, vector<8x32xf32>
    %139 = vector.shape_cast %135 : vector<8x1xi1> to vector<8x1xi1>
    %140 = vector.broadcast %139 : vector<8x1xi1> to vector<8x32xi1>
    %141 = arith.select %140, %128, %109 : vector<8x32xi1>, vector<8x32xf32>
    %c4_i32 = arith.constant 4 : i32
    %c8_i32_38 = arith.constant 8 : i32
    %142 = arith.muli %c4_i32, %c8_i32_38 : i32
    %143 = tpu.assume_multiple %142, 8 : i32
    %144 = arith.index_cast %143 : i32 to index
    %c0_39 = arith.constant 0 : index
    %145 = vector.load %arg13[%144, %c0_39] : memref<64x256xf32, #tpu.memory_space<vmem>>, vector<8x128xf32>
    %cst_40 = arith.constant dense<0.000000e+00> : vector<8x128xf32>
    %146 = tpu.matmul %138, %7, %cst_40 {dimension_numbers = #tpu.dot_dimension_numbers<[1], [0], [0], [1], [0, 0, 1, 1], [], []>} : vector<8x32xf32>, vector<32x128xf32>, vector<8x128xf32> -> vector<8x128xf32>
    %147 = arith.addf %145, %146 : vector<8x128xf32>
    %148 = vector.extract_strided_slice %147 {offsets = [0, 0], sizes = [8, 96], strides = [1, 1]} : vector<8x128xf32> to vector<8x96xf32>
    %149 = arith.negf %148 : vector<8x96xf32>
    %150 = math.exp %149 : vector<8x96xf32>
    %cst_41 = arith.constant 1.000000e+00 : f32
    %151 = vector.broadcast %cst_41 : f32 to vector<8x96xf32>
    %152 = arith.addf %151, %150 : vector<8x96xf32>
    %153 = arith.divf %151, %152 : vector<8x96xf32>
    %154 = vector.extract_strided_slice %147 {offsets = [0, 96], sizes = [8, 32], strides = [1, 1]} : vector<8x128xf32> to vector<8x32xf32>
    %155 = math.tanh %154 : vector<8x32xf32>
    %156 = vector.extract_strided_slice %153 {offsets = [0, 32], sizes = [8, 32], strides = [1, 1]} : vector<8x96xf32> to vector<8x32xf32>
    %157 = arith.mulf %156, %141 : vector<8x32xf32>
    %158 = vector.extract_strided_slice %153 {offsets = [0, 0], sizes = [8, 32], strides = [1, 1]} : vector<8x96xf32> to vector<8x32xf32>
    %159 = arith.mulf %158, %155 : vector<8x32xf32>
    %160 = arith.addf %157, %159 : vector<8x32xf32>
    %161 = vector.extract_strided_slice %153 {offsets = [0, 64], sizes = [8, 32], strides = [1, 1]} : vector<8x96xf32> to vector<8x32xf32>
    %162 = math.tanh %160 : vector<8x32xf32>
    %163 = arith.mulf %161, %162 : vector<8x32xf32>
    %164 = arith.index_cast %143 : i32 to index
    %c0_42 = arith.constant 0 : index
    %165 = vector.load %arg14[%164, %c0_42] : memref<64x32xf32, #tpu.memory_space<vmem>>, vector<8x32xf32>
    tpu.vector_store %arg14[%164, %c0_42], %163 {strides = array<i32>} : memref<64x32xf32, #tpu.memory_space<vmem>>, vector<8x32xf32>,
    %166 = vector.broadcast %c4_i32 : i32 to vector<8x1xi32>
    %167 = arith.cmpi sgt, %9, %166 : vector<8x1xi32>
    %168 = vector.shape_cast %167 : vector<8x1xi1> to vector<8x1xi1>
    %169 = vector.broadcast %168 : vector<8x1xi1> to vector<8x32xi1>
    %170 = arith.select %169, %163, %138 : vector<8x32xi1>, vector<8x32xf32>
    %171 = vector.shape_cast %167 : vector<8x1xi1> to vector<8x1xi1>
    %172 = vector.broadcast %171 : vector<8x1xi1> to vector<8x32xi1>
    %173 = arith.select %172, %160, %141 : vector<8x32xi1>, vector<8x32xf32>
    %c5_i32 = arith.constant 5 : i32
    %c8_i32_43 = arith.constant 8 : i32
    %174 = arith.muli %c5_i32, %c8_i32_43 : i32
    %175 = tpu.assume_multiple %174, 8 : i32
    %176 = arith.index_cast %175 : i32 to index
    %c0_44 = arith.constant 0 : index
    %177 = vector.load %arg13[%176, %c0_44] : memref<64x256xf32, #tpu.memory_space<vmem>>, vector<8x128xf32>
    %cst_45 = arith.constant dense<0.000000e+00> : vector<8x128xf32>
    %178 = tpu.matmul %170, %7, %cst_45 {dimension_numbers = #tpu.dot_dimension_numbers<[1], [0], [0], [1], [0, 0, 1, 1], [], []>} : vector<8x32xf32>, vector<32x128xf32>, vector<8x128xf32> -> vector<8x128xf32>
    %179 = arith.addf %177, %178 : vector<8x128xf32>
    %180 = vector.extract_strided_slice %179 {offsets = [0, 0], sizes = [8, 96], strides = [1, 1]} : vector<8x128xf32> to vector<8x96xf32>
    %181 = arith.negf %180 : vector<8x96xf32>
    %182 = math.exp %181 : vector<8x96xf32>
    %cst_46 = arith.constant 1.000000e+00 : f32
    %183 = vector.broadcast %cst_46 : f32 to vector<8x96xf32>
    %184 = arith.addf %183, %182 : vector<8x96xf32>
    %185 = arith.divf %183, %184 : vector<8x96xf32>
    %186 = vector.extract_strided_slice %179 {offsets = [0, 96], sizes = [8, 32], strides = [1, 1]} : vector<8x128xf32> to vector<8x32xf32>
    %187 = math.tanh %186 : vector<8x32xf32>
    %188 = vector.extract_strided_slice %185 {offsets = [0, 32], sizes = [8, 32], strides = [1, 1]} : vector<8x96xf32> to vector<8x32xf32>
    %189 = arith.mulf %188, %173 : vector<8x32xf32>
    %190 = vector.extract_strided_slice %185 {offsets = [0, 0], sizes = [8, 32], strides = [1, 1]} : vector<8x96xf32> to vector<8x32xf32>
    %191 = arith.mulf %190, %187 : vector<8x32xf32>
    %192 = arith.addf %189, %191 : vector<8x32xf32>
    %193 = vector.extract_strided_slice %185 {offsets = [0, 64], sizes = [8, 32], strides = [1, 1]} : vector<8x96xf32> to vector<8x32xf32>
    %194 = math.tanh %192 : vector<8x32xf32>
    %195 = arith.mulf %193, %194 : vector<8x32xf32>
    %196 = arith.index_cast %175 : i32 to index
    %c0_47 = arith.constant 0 : index
    %197 = vector.load %arg14[%196, %c0_47] : memref<64x32xf32, #tpu.memory_space<vmem>>, vector<8x32xf32>
    tpu.vector_store %arg14[%196, %c0_47], %195 {strides = array<i32>} : memref<64x32xf32, #tpu.memory_space<vmem>>, vector<8x32xf32>,
    %198 = vector.broadcast %c5_i32 : i32 to vector<8x1xi32>
    %199 = arith.cmpi sgt, %9, %198 : vector<8x1xi32>
    %200 = vector.shape_cast %199 : vector<8x1xi1> to vector<8x1xi1>
    %201 = vector.broadcast %200 : vector<8x1xi1> to vector<8x32xi1>
    %202 = arith.select %201, %195, %170 : vector<8x32xi1>, vector<8x32xf32>
    %203 = vector.shape_cast %199 : vector<8x1xi1> to vector<8x1xi1>
    %204 = vector.broadcast %203 : vector<8x1xi1> to vector<8x32xi1>
    %205 = arith.select %204, %192, %173 : vector<8x32xi1>, vector<8x32xf32>
    %c6_i32 = arith.constant 6 : i32
    %c8_i32_48 = arith.constant 8 : i32
    %206 = arith.muli %c6_i32, %c8_i32_48 : i32
    %207 = tpu.assume_multiple %206, 8 : i32
    %208 = arith.index_cast %207 : i32 to index
    %c0_49 = arith.constant 0 : index
    %209 = vector.load %arg13[%208, %c0_49] : memref<64x256xf32, #tpu.memory_space<vmem>>, vector<8x128xf32>
    %cst_50 = arith.constant dense<0.000000e+00> : vector<8x128xf32>
    %210 = tpu.matmul %202, %7, %cst_50 {dimension_numbers = #tpu.dot_dimension_numbers<[1], [0], [0], [1], [0, 0, 1, 1], [], []>} : vector<8x32xf32>, vector<32x128xf32>, vector<8x128xf32> -> vector<8x128xf32>
    %211 = arith.addf %209, %210 : vector<8x128xf32>
    %212 = vector.extract_strided_slice %211 {offsets = [0, 0], sizes = [8, 96], strides = [1, 1]} : vector<8x128xf32> to vector<8x96xf32>
    %213 = arith.negf %212 : vector<8x96xf32>
    %214 = math.exp %213 : vector<8x96xf32>
    %cst_51 = arith.constant 1.000000e+00 : f32
    %215 = vector.broadcast %cst_51 : f32 to vector<8x96xf32>
    %216 = arith.addf %215, %214 : vector<8x96xf32>
    %217 = arith.divf %215, %216 : vector<8x96xf32>
    %218 = vector.extract_strided_slice %211 {offsets = [0, 96], sizes = [8, 32], strides = [1, 1]} : vector<8x128xf32> to vector<8x32xf32>
    %219 = math.tanh %218 : vector<8x32xf32>
    %220 = vector.extract_strided_slice %217 {offsets = [0, 32], sizes = [8, 32], strides = [1, 1]} : vector<8x96xf32> to vector<8x32xf32>
    %221 = arith.mulf %220, %205 : vector<8x32xf32>
    %222 = vector.extract_strided_slice %217 {offsets = [0, 0], sizes = [8, 32], strides = [1, 1]} : vector<8x96xf32> to vector<8x32xf32>
    %223 = arith.mulf %222, %219 : vector<8x32xf32>
    %224 = arith.addf %221, %223 : vector<8x32xf32>
    %225 = vector.extract_strided_slice %217 {offsets = [0, 64], sizes = [8, 32], strides = [1, 1]} : vector<8x96xf32> to vector<8x32xf32>
    %226 = math.tanh %224 : vector<8x32xf32>
    %227 = arith.mulf %225, %226 : vector<8x32xf32>
    %228 = arith.index_cast %207 : i32 to index
    %c0_52 = arith.constant 0 : index
    %229 = vector.load %arg14[%228, %c0_52] : memref<64x32xf32, #tpu.memory_space<vmem>>, vector<8x32xf32>
    tpu.vector_store %arg14[%228, %c0_52], %227 {strides = array<i32>} : memref<64x32xf32, #tpu.memory_space<vmem>>, vector<8x32xf32>,
    %230 = vector.broadcast %c6_i32 : i32 to vector<8x1xi32>
    %231 = arith.cmpi sgt, %9, %230 : vector<8x1xi32>
    %232 = vector.shape_cast %231 : vector<8x1xi1> to vector<8x1xi1>
    %233 = vector.broadcast %232 : vector<8x1xi1> to vector<8x32xi1>
    %234 = arith.select %233, %227, %202 : vector<8x32xi1>, vector<8x32xf32>
    %235 = vector.shape_cast %231 : vector<8x1xi1> to vector<8x1xi1>
    %236 = vector.broadcast %235 : vector<8x1xi1> to vector<8x32xi1>
    %237 = arith.select %236, %224, %205 : vector<8x32xi1>, vector<8x32xf32>
    %c7_i32 = arith.constant 7 : i32
    %c8_i32_53 = arith.constant 8 : i32
    %238 = arith.muli %c7_i32, %c8_i32_53 : i32
    %239 = tpu.assume_multiple %238, 8 : i32
    %240 = arith.index_cast %239 : i32 to index
    %c0_54 = arith.constant 0 : index
    %241 = vector.load %arg13[%240, %c0_54] : memref<64x256xf32, #tpu.memory_space<vmem>>, vector<8x128xf32>
    %cst_55 = arith.constant dense<0.000000e+00> : vector<8x128xf32>
    %242 = tpu.matmul %234, %7, %cst_55 {dimension_numbers = #tpu.dot_dimension_numbers<[1], [0], [0], [1], [0, 0, 1, 1], [], []>} : vector<8x32xf32>, vector<32x128xf32>, vector<8x128xf32> -> vector<8x128xf32>
    %243 = arith.addf %241, %242 : vector<8x128xf32>
    %244 = vector.extract_strided_slice %243 {offsets = [0, 0], sizes = [8, 96], strides = [1, 1]} : vector<8x128xf32> to vector<8x96xf32>
    %245 = arith.negf %244 : vector<8x96xf32>
    %246 = math.exp %245 : vector<8x96xf32>
    %cst_56 = arith.constant 1.000000e+00 : f32
    %247 = vector.broadcast %cst_56 : f32 to vector<8x96xf32>
    %248 = arith.addf %247, %246 : vector<8x96xf32>
    %249 = arith.divf %247, %248 : vector<8x96xf32>
    %250 = vector.extract_strided_slice %243 {offsets = [0, 96], sizes = [8, 32], strides = [1, 1]} : vector<8x128xf32> to vector<8x32xf32>
    %251 = math.tanh %250 : vector<8x32xf32>
    %252 = vector.extract_strided_slice %249 {offsets = [0, 32], sizes = [8, 32], strides = [1, 1]} : vector<8x96xf32> to vector<8x32xf32>
    %253 = arith.mulf %252, %237 : vector<8x32xf32>
    %254 = vector.extract_strided_slice %249 {offsets = [0, 0], sizes = [8, 32], strides = [1, 1]} : vector<8x96xf32> to vector<8x32xf32>
    %255 = arith.mulf %254, %251 : vector<8x32xf32>
    %256 = arith.addf %253, %255 : vector<8x32xf32>
    %257 = vector.extract_strided_slice %249 {offsets = [0, 64], sizes = [8, 32], strides = [1, 1]} : vector<8x96xf32> to vector<8x32xf32>
    %258 = math.tanh %256 : vector<8x32xf32>
    %259 = arith.mulf %257, %258 : vector<8x32xf32>
    %260 = arith.index_cast %239 : i32 to index
    %c0_57 = arith.constant 0 : index
    %261 = vector.load %arg14[%260, %c0_57] : memref<64x32xf32, #tpu.memory_space<vmem>>, vector<8x32xf32>
    tpu.vector_store %arg14[%260, %c0_57], %259 {strides = array<i32>} : memref<64x32xf32, #tpu.memory_space<vmem>>, vector<8x32xf32>,
    %262 = vector.broadcast %c7_i32 : i32 to vector<8x1xi32>
    %263 = arith.cmpi sgt, %9, %262 : vector<8x1xi32>
    %264 = vector.shape_cast %263 : vector<8x1xi1> to vector<8x1xi1>
    %265 = vector.broadcast %264 : vector<8x1xi1> to vector<8x32xi1>
    %266 = arith.select %265, %259, %234 : vector<8x32xi1>, vector<8x32xf32>
    %267 = vector.shape_cast %263 : vector<8x1xi1> to vector<8x1xi1>
    %268 = vector.broadcast %267 : vector<8x1xi1> to vector<8x32xi1>
    %269 = arith.select %268, %256, %237 : vector<8x32xi1>, vector<8x32xf32>
    %c8_i32_58 = arith.constant 8 : i32
    %c1 = arith.constant 1 : index
    %c0_59 = arith.constant 0 : index
    %c0_60 = arith.constant 0 : index
    %270 = vector.load %arg3[%c1, %c0_59, %c0_60] : memref<2x8x32xf32, #tpu.memory_space<vmem>>, vector<1x8x32xf32>
    %271 = vector.shape_cast %270 : vector<1x8x32xf32> to vector<8x32xf32>
    %c1_61 = arith.constant 1 : index
    %c0_62 = arith.constant 0 : index
    %c0_63 = arith.constant 0 : index
    %272 = vector.load %arg4[%c1_61, %c0_62, %c0_63] : memref<2x8x32xf32, #tpu.memory_space<vmem>>, vector<1x8x32xf32>
    %273 = vector.shape_cast %272 : vector<1x8x32xf32> to vector<8x32xf32>
    %c0_i32_64 = arith.constant 0 : i32
    %c7_i32_65 = arith.constant 7 : i32
    %274 = arith.subi %c7_i32_65, %c0_i32_64 : i32
    %c8_i32_66 = arith.constant 8 : i32
    %275 = arith.muli %274, %c8_i32_66 : i32
    %276 = tpu.assume_multiple %275, 8 : i32
    %277 = arith.index_cast %276 : i32 to index
    %c128 = arith.constant 128 : index
    %278 = vector.load %arg13[%277, %c128] : memref<64x256xf32, #tpu.memory_space<vmem>>, vector<8x128xf32>
    %cst_67 = arith.constant dense<0.000000e+00> : vector<8x128xf32>
    %279 = tpu.matmul %271, %8, %cst_67 {dimension_numbers = #tpu.dot_dimension_numbers<[1], [0], [0], [1], [0, 0, 1, 1], [], []>} : vector<8x32xf32>, vector<32x128xf32>, vector<8x128xf32> -> vector<8x128xf32>
    %280 = arith.addf %278, %279 : vector<8x128xf32>
    %281 = vector.extract_strided_slice %280 {offsets = [0, 0], sizes = [8, 96], strides = [1, 1]} : vector<8x128xf32> to vector<8x96xf32>
    %282 = arith.negf %281 : vector<8x96xf32>
    %283 = math.exp %282 : vector<8x96xf32>
    %cst_68 = arith.constant 1.000000e+00 : f32
    %284 = vector.broadcast %cst_68 : f32 to vector<8x96xf32>
    %285 = arith.addf %284, %283 : vector<8x96xf32>
    %286 = arith.divf %284, %285 : vector<8x96xf32>
    %287 = vector.extract_strided_slice %280 {offsets = [0, 96], sizes = [8, 32], strides = [1, 1]} : vector<8x128xf32> to vector<8x32xf32>
    %288 = math.tanh %287 : vector<8x32xf32>
    %289 = vector.extract_strided_slice %286 {offsets = [0, 32], sizes = [8, 32], strides = [1, 1]} : vector<8x96xf32> to vector<8x32xf32>
    %290 = arith.mulf %289, %273 : vector<8x32xf32>
    %291 = vector.extract_strided_slice %286 {offsets = [0, 0], sizes = [8, 32], strides = [1, 1]} : vector<8x96xf32> to vector<8x32xf32>
    %292 = arith.mulf %291, %288 : vector<8x32xf32>
    %293 = arith.addf %290, %292 : vector<8x32xf32>
    %294 = vector.extract_strided_slice %286 {offsets = [0, 64], sizes = [8, 32], strides = [1, 1]} : vector<8x96xf32> to vector<8x32xf32>
    %295 = math.tanh %293 : vector<8x32xf32>
    %296 = arith.mulf %294, %295 : vector<8x32xf32>
    %297 = arith.index_cast %276 : i32 to index
    %c0_69 = arith.constant 0 : index
    %298 = vector.load %arg15[%297, %c0_69] : memref<64x32xf32, #tpu.memory_space<vmem>>, vector<8x32xf32>
    tpu.vector_store %arg15[%297, %c0_69], %296 {strides = array<i32>} : memref<64x32xf32, #tpu.memory_space<vmem>>, vector<8x32xf32>,
    %299 = vector.broadcast %274 : i32 to vector<8x1xi32>
    %300 = arith.cmpi sgt, %9, %299 : vector<8x1xi32>
    %301 = vector.shape_cast %300 : vector<8x1xi1> to vector<8x1xi1>
    %302 = vector.broadcast %301 : vector<8x1xi1> to vector<8x32xi1>
    %303 = arith.select %302, %296, %271 : vector<8x32xi1>, vector<8x32xf32>
    %304 = vector.shape_cast %300 : vector<8x1xi1> to vector<8x1xi1>
    %305 = vector.broadcast %304 : vector<8x1xi1> to vector<8x32xi1>
    %306 = arith.select %305, %293, %273 : vector<8x32xi1>, vector<8x32xf32>
    %c1_i32_70 = arith.constant 1 : i32
    %c7_i32_71 = arith.constant 7 : i32
    %307 = arith.subi %c7_i32_71, %c1_i32_70 : i32
    %c8_i32_72 = arith.constant 8 : i32
    %308 = arith.muli %307, %c8_i32_72 : i32
    %309 = tpu.assume_multiple %308, 8 : i32
    %310 = arith.index_cast %309 : i32 to index
    %c128_73 = arith.constant 128 : index
    %311 = vector.load %arg13[%310, %c128_73] : memref<64x256xf32, #tpu.memory_space<vmem>>, vector<8x128xf32>
    %cst_74 = arith.constant dense<0.000000e+00> : vector<8x128xf32>
    %312 = tpu.matmul %303, %8, %cst_74 {dimension_numbers = #tpu.dot_dimension_numbers<[1], [0], [0], [1], [0, 0, 1, 1], [], []>} : vector<8x32xf32>, vector<32x128xf32>, vector<8x128xf32> -> vector<8x128xf32>
    %313 = arith.addf %311, %312 : vector<8x128xf32>
    %314 = vector.extract_strided_slice %313 {offsets = [0, 0], sizes = [8, 96], strides = [1, 1]} : vector<8x128xf32> to vector<8x96xf32>
    %315 = arith.negf %314 : vector<8x96xf32>
    %316 = math.exp %315 : vector<8x96xf32>
    %cst_75 = arith.constant 1.000000e+00 : f32
    %317 = vector.broadcast %cst_75 : f32 to vector<8x96xf32>
    %318 = arith.addf %317, %316 : vector<8x96xf32>
    %319 = arith.divf %317, %318 : vector<8x96xf32>
    %320 = vector.extract_strided_slice %313 {offsets = [0, 96], sizes = [8, 32], strides = [1, 1]} : vector<8x128xf32> to vector<8x32xf32>
    %321 = math.tanh %320 : vector<8x32xf32>
    %322 = vector.extract_strided_slice %319 {offsets = [0, 32], sizes = [8, 32], strides = [1, 1]} : vector<8x96xf32> to vector<8x32xf32>
    %323 = arith.mulf %322, %306 : vector<8x32xf32>
    %324 = vector.extract_strided_slice %319 {offsets = [0, 0], sizes = [8, 32], strides = [1, 1]} : vector<8x96xf32> to vector<8x32xf32>
    %325 = arith.mulf %324, %321 : vector<8x32xf32>
    %326 = arith.addf %323, %325 : vector<8x32xf32>
    %327 = vector.extract_strided_slice %319 {offsets = [0, 64], sizes = [8, 32], strides = [1, 1]} : vector<8x96xf32> to vector<8x32xf32>
    %328 = math.tanh %326 : vector<8x32xf32>
    %329 = arith.mulf %327, %328 : vector<8x32xf32>
    %330 = arith.index_cast %309 : i32 to index
    %c0_76 = arith.constant 0 : index
    %331 = vector.load %arg15[%330, %c0_76] : memref<64x32xf32, #tpu.memory_space<vmem>>, vector<8x32xf32>
    tpu.vector_store %arg15[%330, %c0_76], %329 {strides = array<i32>} : memref<64x32xf32, #tpu.memory_space<vmem>>, vector<8x32xf32>,
    %332 = vector.broadcast %307 : i32 to vector<8x1xi32>
    %333 = arith.cmpi sgt, %9, %332 : vector<8x1xi32>
    %334 = vector.shape_cast %333 : vector<8x1xi1> to vector<8x1xi1>
    %335 = vector.broadcast %334 : vector<8x1xi1> to vector<8x32xi1>
    %336 = arith.select %335, %329, %303 : vector<8x32xi1>, vector<8x32xf32>
    %337 = vector.shape_cast %333 : vector<8x1xi1> to vector<8x1xi1>
    %338 = vector.broadcast %337 : vector<8x1xi1> to vector<8x32xi1>
    %339 = arith.select %338, %326, %306 : vector<8x32xi1>, vector<8x32xf32>
    %c2_i32_77 = arith.constant 2 : i32
    %c7_i32_78 = arith.constant 7 : i32
    %340 = arith.subi %c7_i32_78, %c2_i32_77 : i32
    %c8_i32_79 = arith.constant 8 : i32
    %341 = arith.muli %340, %c8_i32_79 : i32
    %342 = tpu.assume_multiple %341, 8 : i32
    %343 = arith.index_cast %342 : i32 to index
    %c128_80 = arith.constant 128 : index
    %344 = vector.load %arg13[%343, %c128_80] : memref<64x256xf32, #tpu.memory_space<vmem>>, vector<8x128xf32>
    %cst_81 = arith.constant dense<0.000000e+00> : vector<8x128xf32>
    %345 = tpu.matmul %336, %8, %cst_81 {dimension_numbers = #tpu.dot_dimension_numbers<[1], [0], [0], [1], [0, 0, 1, 1], [], []>} : vector<8x32xf32>, vector<32x128xf32>, vector<8x128xf32> -> vector<8x128xf32>
    %346 = arith.addf %344, %345 : vector<8x128xf32>
    %347 = vector.extract_strided_slice %346 {offsets = [0, 0], sizes = [8, 96], strides = [1, 1]} : vector<8x128xf32> to vector<8x96xf32>
    %348 = arith.negf %347 : vector<8x96xf32>
    %349 = math.exp %348 : vector<8x96xf32>
    %cst_82 = arith.constant 1.000000e+00 : f32
    %350 = vector.broadcast %cst_82 : f32 to vector<8x96xf32>
    %351 = arith.addf %350, %349 : vector<8x96xf32>
    %352 = arith.divf %350, %351 : vector<8x96xf32>
    %353 = vector.extract_strided_slice %346 {offsets = [0, 96], sizes = [8, 32], strides = [1, 1]} : vector<8x128xf32> to vector<8x32xf32>
    %354 = math.tanh %353 : vector<8x32xf32>
    %355 = vector.extract_strided_slice %352 {offsets = [0, 32], sizes = [8, 32], strides = [1, 1]} : vector<8x96xf32> to vector<8x32xf32>
    %356 = arith.mulf %355, %339 : vector<8x32xf32>
    %357 = vector.extract_strided_slice %352 {offsets = [0, 0], sizes = [8, 32], strides = [1, 1]} : vector<8x96xf32> to vector<8x32xf32>
    %358 = arith.mulf %357, %354 : vector<8x32xf32>
    %359 = arith.addf %356, %358 : vector<8x32xf32>
    %360 = vector.extract_strided_slice %352 {offsets = [0, 64], sizes = [8, 32], strides = [1, 1]} : vector<8x96xf32> to vector<8x32xf32>
    %361 = math.tanh %359 : vector<8x32xf32>
    %362 = arith.mulf %360, %361 : vector<8x32xf32>
    %363 = arith.index_cast %342 : i32 to index
    %c0_83 = arith.constant 0 : index
    %364 = vector.load %arg15[%363, %c0_83] : memref<64x32xf32, #tpu.memory_space<vmem>>, vector<8x32xf32>
    tpu.vector_store %arg15[%363, %c0_83], %362 {strides = array<i32>} : memref<64x32xf32, #tpu.memory_space<vmem>>, vector<8x32xf32>,
    %365 = vector.broadcast %340 : i32 to vector<8x1xi32>
    %366 = arith.cmpi sgt, %9, %365 : vector<8x1xi32>
    %367 = vector.shape_cast %366 : vector<8x1xi1> to vector<8x1xi1>
    %368 = vector.broadcast %367 : vector<8x1xi1> to vector<8x32xi1>
    %369 = arith.select %368, %362, %336 : vector<8x32xi1>, vector<8x32xf32>
    %370 = vector.shape_cast %366 : vector<8x1xi1> to vector<8x1xi1>
    %371 = vector.broadcast %370 : vector<8x1xi1> to vector<8x32xi1>
    %372 = arith.select %371, %359, %339 : vector<8x32xi1>, vector<8x32xf32>
    %c3_i32_84 = arith.constant 3 : i32
    %c7_i32_85 = arith.constant 7 : i32
    %373 = arith.subi %c7_i32_85, %c3_i32_84 : i32
    %c8_i32_86 = arith.constant 8 : i32
    %374 = arith.muli %373, %c8_i32_86 : i32
    %375 = tpu.assume_multiple %374, 8 : i32
    %376 = arith.index_cast %375 : i32 to index
    %c128_87 = arith.constant 128 : index
    %377 = vector.load %arg13[%376, %c128_87] : memref<64x256xf32, #tpu.memory_space<vmem>>, vector<8x128xf32>
    %cst_88 = arith.constant dense<0.000000e+00> : vector<8x128xf32>
    %378 = tpu.matmul %369, %8, %cst_88 {dimension_numbers = #tpu.dot_dimension_numbers<[1], [0], [0], [1], [0, 0, 1, 1], [], []>} : vector<8x32xf32>, vector<32x128xf32>, vector<8x128xf32> -> vector<8x128xf32>
    %379 = arith.addf %377, %378 : vector<8x128xf32>
    %380 = vector.extract_strided_slice %379 {offsets = [0, 0], sizes = [8, 96], strides = [1, 1]} : vector<8x128xf32> to vector<8x96xf32>
    %381 = arith.negf %380 : vector<8x96xf32>
    %382 = math.exp %381 : vector<8x96xf32>
    %cst_89 = arith.constant 1.000000e+00 : f32
    %383 = vector.broadcast %cst_89 : f32 to vector<8x96xf32>
    %384 = arith.addf %383, %382 : vector<8x96xf32>
    %385 = arith.divf %383, %384 : vector<8x96xf32>
    %386 = vector.extract_strided_slice %379 {offsets = [0, 96], sizes = [8, 32], strides = [1, 1]} : vector<8x128xf32> to vector<8x32xf32>
    %387 = math.tanh %386 : vector<8x32xf32>
    %388 = vector.extract_strided_slice %385 {offsets = [0, 32], sizes = [8, 32], strides = [1, 1]} : vector<8x96xf32> to vector<8x32xf32>
    %389 = arith.mulf %388, %372 : vector<8x32xf32>
    %390 = vector.extract_strided_slice %385 {offsets = [0, 0], sizes = [8, 32], strides = [1, 1]} : vector<8x96xf32> to vector<8x32xf32>
    %391 = arith.mulf %390, %387 : vector<8x32xf32>
    %392 = arith.addf %389, %391 : vector<8x32xf32>
    %393 = vector.extract_strided_slice %385 {offsets = [0, 64], sizes = [8, 32], strides = [1, 1]} : vector<8x96xf32> to vector<8x32xf32>
    %394 = math.tanh %392 : vector<8x32xf32>
    %395 = arith.mulf %393, %394 : vector<8x32xf32>
    %396 = arith.index_cast %375 : i32 to index
    %c0_90 = arith.constant 0 : index
    %397 = vector.load %arg15[%396, %c0_90] : memref<64x32xf32, #tpu.memory_space<vmem>>, vector<8x32xf32>
    tpu.vector_store %arg15[%396, %c0_90], %395 {strides = array<i32>} : memref<64x32xf32, #tpu.memory_space<vmem>>, vector<8x32xf32>,
    %398 = vector.broadcast %373 : i32 to vector<8x1xi32>
    %399 = arith.cmpi sgt, %9, %398 : vector<8x1xi32>
    %400 = vector.shape_cast %399 : vector<8x1xi1> to vector<8x1xi1>
    %401 = vector.broadcast %400 : vector<8x1xi1> to vector<8x32xi1>
    %402 = arith.select %401, %395, %369 : vector<8x32xi1>, vector<8x32xf32>
    %403 = vector.shape_cast %399 : vector<8x1xi1> to vector<8x1xi1>
    %404 = vector.broadcast %403 : vector<8x1xi1> to vector<8x32xi1>
    %405 = arith.select %404, %392, %372 : vector<8x32xi1>, vector<8x32xf32>
    %c4_i32_91 = arith.constant 4 : i32
    %c7_i32_92 = arith.constant 7 : i32
    %406 = arith.subi %c7_i32_92, %c4_i32_91 : i32
    %c8_i32_93 = arith.constant 8 : i32
    %407 = arith.muli %406, %c8_i32_93 : i32
    %408 = tpu.assume_multiple %407, 8 : i32
    %409 = arith.index_cast %408 : i32 to index
    %c128_94 = arith.constant 128 : index
    %410 = vector.load %arg13[%409, %c128_94] : memref<64x256xf32, #tpu.memory_space<vmem>>, vector<8x128xf32>
    %cst_95 = arith.constant dense<0.000000e+00> : vector<8x128xf32>
    %411 = tpu.matmul %402, %8, %cst_95 {dimension_numbers = #tpu.dot_dimension_numbers<[1], [0], [0], [1], [0, 0, 1, 1], [], []>} : vector<8x32xf32>, vector<32x128xf32>, vector<8x128xf32> -> vector<8x128xf32>
    %412 = arith.addf %410, %411 : vector<8x128xf32>
    %413 = vector.extract_strided_slice %412 {offsets = [0, 0], sizes = [8, 96], strides = [1, 1]} : vector<8x128xf32> to vector<8x96xf32>
    %414 = arith.negf %413 : vector<8x96xf32>
    %415 = math.exp %414 : vector<8x96xf32>
    %cst_96 = arith.constant 1.000000e+00 : f32
    %416 = vector.broadcast %cst_96 : f32 to vector<8x96xf32>
    %417 = arith.addf %416, %415 : vector<8x96xf32>
    %418 = arith.divf %416, %417 : vector<8x96xf32>
    %419 = vector.extract_strided_slice %412 {offsets = [0, 96], sizes = [8, 32], strides = [1, 1]} : vector<8x128xf32> to vector<8x32xf32>
    %420 = math.tanh %419 : vector<8x32xf32>
    %421 = vector.extract_strided_slice %418 {offsets = [0, 32], sizes = [8, 32], strides = [1, 1]} : vector<8x96xf32> to vector<8x32xf32>
    %422 = arith.mulf %421, %405 : vector<8x32xf32>
    %423 = vector.extract_strided_slice %418 {offsets = [0, 0], sizes = [8, 32], strides = [1, 1]} : vector<8x96xf32> to vector<8x32xf32>
    %424 = arith.mulf %423, %420 : vector<8x32xf32>
    %425 = arith.addf %422, %424 : vector<8x32xf32>
    %426 = vector.extract_strided_slice %418 {offsets = [0, 64], sizes = [8, 32], strides = [1, 1]} : vector<8x96xf32> to vector<8x32xf32>
    %427 = math.tanh %425 : vector<8x32xf32>
    %428 = arith.mulf %426, %427 : vector<8x32xf32>
    %429 = arith.index_cast %408 : i32 to index
    %c0_97 = arith.constant 0 : index
    %430 = vector.load %arg15[%429, %c0_97] : memref<64x32xf32, #tpu.memory_space<vmem>>, vector<8x32xf32>
    tpu.vector_store %arg15[%429, %c0_97], %428 {strides = array<i32>} : memref<64x32xf32, #tpu.memory_space<vmem>>, vector<8x32xf32>,
    %431 = vector.broadcast %406 : i32 to vector<8x1xi32>
    %432 = arith.cmpi sgt, %9, %431 : vector<8x1xi32>
    %433 = vector.shape_cast %432 : vector<8x1xi1> to vector<8x1xi1>
    %434 = vector.broadcast %433 : vector<8x1xi1> to vector<8x32xi1>
    %435 = arith.select %434, %428, %402 : vector<8x32xi1>, vector<8x32xf32>
    %436 = vector.shape_cast %432 : vector<8x1xi1> to vector<8x1xi1>
    %437 = vector.broadcast %436 : vector<8x1xi1> to vector<8x32xi1>
    %438 = arith.select %437, %425, %405 : vector<8x32xi1>, vector<8x32xf32>
    %c5_i32_98 = arith.constant 5 : i32
    %c7_i32_99 = arith.constant 7 : i32
    %439 = arith.subi %c7_i32_99, %c5_i32_98 : i32
    %c8_i32_100 = arith.constant 8 : i32
    %440 = arith.muli %439, %c8_i32_100 : i32
    %441 = tpu.assume_multiple %440, 8 : i32
    %442 = arith.index_cast %441 : i32 to index
    %c128_101 = arith.constant 128 : index
    %443 = vector.load %arg13[%442, %c128_101] : memref<64x256xf32, #tpu.memory_space<vmem>>, vector<8x128xf32>
    %cst_102 = arith.constant dense<0.000000e+00> : vector<8x128xf32>
    %444 = tpu.matmul %435, %8, %cst_102 {dimension_numbers = #tpu.dot_dimension_numbers<[1], [0], [0], [1], [0, 0, 1, 1], [], []>} : vector<8x32xf32>, vector<32x128xf32>, vector<8x128xf32> -> vector<8x128xf32>
    %445 = arith.addf %443, %444 : vector<8x128xf32>
    %446 = vector.extract_strided_slice %445 {offsets = [0, 0], sizes = [8, 96], strides = [1, 1]} : vector<8x128xf32> to vector<8x96xf32>
    %447 = arith.negf %446 : vector<8x96xf32>
    %448 = math.exp %447 : vector<8x96xf32>
    %cst_103 = arith.constant 1.000000e+00 : f32
    %449 = vector.broadcast %cst_103 : f32 to vector<8x96xf32>
    %450 = arith.addf %449, %448 : vector<8x96xf32>
    %451 = arith.divf %449, %450 : vector<8x96xf32>
    %452 = vector.extract_strided_slice %445 {offsets = [0, 96], sizes = [8, 32], strides = [1, 1]} : vector<8x128xf32> to vector<8x32xf32>
    %453 = math.tanh %452 : vector<8x32xf32>
    %454 = vector.extract_strided_slice %451 {offsets = [0, 32], sizes = [8, 32], strides = [1, 1]} : vector<8x96xf32> to vector<8x32xf32>
    %455 = arith.mulf %454, %438 : vector<8x32xf32>
    %456 = vector.extract_strided_slice %451 {offsets = [0, 0], sizes = [8, 32], strides = [1, 1]} : vector<8x96xf32> to vector<8x32xf32>
    %457 = arith.mulf %456, %453 : vector<8x32xf32>
    %458 = arith.addf %455, %457 : vector<8x32xf32>
    %459 = vector.extract_strided_slice %451 {offsets = [0, 64], sizes = [8, 32], strides = [1, 1]} : vector<8x96xf32> to vector<8x32xf32>
    %460 = math.tanh %458 : vector<8x32xf32>
    %461 = arith.mulf %459, %460 : vector<8x32xf32>
    %462 = arith.index_cast %441 : i32 to index
    %c0_104 = arith.constant 0 : index
    %463 = vector.load %arg15[%462, %c0_104] : memref<64x32xf32, #tpu.memory_space<vmem>>, vector<8x32xf32>
    tpu.vector_store %arg15[%462, %c0_104], %461 {strides = array<i32>} : memref<64x32xf32, #tpu.memory_space<vmem>>, vector<8x32xf32>,
    %464 = vector.broadcast %439 : i32 to vector<8x1xi32>
    %465 = arith.cmpi sgt, %9, %464 : vector<8x1xi32>
    %466 = vector.shape_cast %465 : vector<8x1xi1> to vector<8x1xi1>
    %467 = vector.broadcast %466 : vector<8x1xi1> to vector<8x32xi1>
    %468 = arith.select %467, %461, %435 : vector<8x32xi1>, vector<8x32xf32>
    %469 = vector.shape_cast %465 : vector<8x1xi1> to vector<8x1xi1>
    %470 = vector.broadcast %469 : vector<8x1xi1> to vector<8x32xi1>
    %471 = arith.select %470, %458, %438 : vector<8x32xi1>, vector<8x32xf32>
    %c6_i32_105 = arith.constant 6 : i32
    %c7_i32_106 = arith.constant 7 : i32
    %472 = arith.subi %c7_i32_106, %c6_i32_105 : i32
    %c8_i32_107 = arith.constant 8 : i32
    %473 = arith.muli %472, %c8_i32_107 : i32
    %474 = tpu.assume_multiple %473, 8 : i32
    %475 = arith.index_cast %474 : i32 to index
    %c128_108 = arith.constant 128 : index
    %476 = vector.load %arg13[%475, %c128_108] : memref<64x256xf32, #tpu.memory_space<vmem>>, vector<8x128xf32>
    %cst_109 = arith.constant dense<0.000000e+00> : vector<8x128xf32>
    %477 = tpu.matmul %468, %8, %cst_109 {dimension_numbers = #tpu.dot_dimension_numbers<[1], [0], [0], [1], [0, 0, 1, 1], [], []>} : vector<8x32xf32>, vector<32x128xf32>, vector<8x128xf32> -> vector<8x128xf32>
    %478 = arith.addf %476, %477 : vector<8x128xf32>
    %479 = vector.extract_strided_slice %478 {offsets = [0, 0], sizes = [8, 96], strides = [1, 1]} : vector<8x128xf32> to vector<8x96xf32>
    %480 = arith.negf %479 : vector<8x96xf32>
    %481 = math.exp %480 : vector<8x96xf32>
    %cst_110 = arith.constant 1.000000e+00 : f32
    %482 = vector.broadcast %cst_110 : f32 to vector<8x96xf32>
    %483 = arith.addf %482, %481 : vector<8x96xf32>
    %484 = arith.divf %482, %483 : vector<8x96xf32>
    %485 = vector.extract_strided_slice %478 {offsets = [0, 96], sizes = [8, 32], strides = [1, 1]} : vector<8x128xf32> to vector<8x32xf32>
    %486 = math.tanh %485 : vector<8x32xf32>
    %487 = vector.extract_strided_slice %484 {offsets = [0, 32], sizes = [8, 32], strides = [1, 1]} : vector<8x96xf32> to vector<8x32xf32>
    %488 = arith.mulf %487, %471 : vector<8x32xf32>
    %489 = vector.extract_strided_slice %484 {offsets = [0, 0], sizes = [8, 32], strides = [1, 1]} : vector<8x96xf32> to vector<8x32xf32>
    %490 = arith.mulf %489, %486 : vector<8x32xf32>
    %491 = arith.addf %488, %490 : vector<8x32xf32>
    %492 = vector.extract_strided_slice %484 {offsets = [0, 64], sizes = [8, 32], strides = [1, 1]} : vector<8x96xf32> to vector<8x32xf32>
    %493 = math.tanh %491 : vector<8x32xf32>
    %494 = arith.mulf %492, %493 : vector<8x32xf32>
    %495 = arith.index_cast %474 : i32 to index
    %c0_111 = arith.constant 0 : index
    %496 = vector.load %arg15[%495, %c0_111] : memref<64x32xf32, #tpu.memory_space<vmem>>, vector<8x32xf32>
    tpu.vector_store %arg15[%495, %c0_111], %494 {strides = array<i32>} : memref<64x32xf32, #tpu.memory_space<vmem>>, vector<8x32xf32>,
    %497 = vector.broadcast %472 : i32 to vector<8x1xi32>
    %498 = arith.cmpi sgt, %9, %497 : vector<8x1xi32>
    %499 = vector.shape_cast %498 : vector<8x1xi1> to vector<8x1xi1>
    %500 = vector.broadcast %499 : vector<8x1xi1> to vector<8x32xi1>
    %501 = arith.select %500, %494, %468 : vector<8x32xi1>, vector<8x32xf32>
    %502 = vector.shape_cast %498 : vector<8x1xi1> to vector<8x1xi1>
    %503 = vector.broadcast %502 : vector<8x1xi1> to vector<8x32xi1>
    %504 = arith.select %503, %491, %471 : vector<8x32xi1>, vector<8x32xf32>
    %c7_i32_112 = arith.constant 7 : i32
    %c7_i32_113 = arith.constant 7 : i32
    %505 = arith.subi %c7_i32_113, %c7_i32_112 : i32
    %c8_i32_114 = arith.constant 8 : i32
    %506 = arith.muli %505, %c8_i32_114 : i32
    %507 = tpu.assume_multiple %506, 8 : i32
    %508 = arith.index_cast %507 : i32 to index
    %c128_115 = arith.constant 128 : index
    %509 = vector.load %arg13[%508, %c128_115] : memref<64x256xf32, #tpu.memory_space<vmem>>, vector<8x128xf32>
    %cst_116 = arith.constant dense<0.000000e+00> : vector<8x128xf32>
    %510 = tpu.matmul %501, %8, %cst_116 {dimension_numbers = #tpu.dot_dimension_numbers<[1], [0], [0], [1], [0, 0, 1, 1], [], []>} : vector<8x32xf32>, vector<32x128xf32>, vector<8x128xf32> -> vector<8x128xf32>
    %511 = arith.addf %509, %510 : vector<8x128xf32>
    %512 = vector.extract_strided_slice %511 {offsets = [0, 0], sizes = [8, 96], strides = [1, 1]} : vector<8x128xf32> to vector<8x96xf32>
    %513 = arith.negf %512 : vector<8x96xf32>
    %514 = math.exp %513 : vector<8x96xf32>
    %cst_117 = arith.constant 1.000000e+00 : f32
    %515 = vector.broadcast %cst_117 : f32 to vector<8x96xf32>
    %516 = arith.addf %515, %514 : vector<8x96xf32>
    %517 = arith.divf %515, %516 : vector<8x96xf32>
    %518 = vector.extract_strided_slice %511 {offsets = [0, 96], sizes = [8, 32], strides = [1, 1]} : vector<8x128xf32> to vector<8x32xf32>
    %519 = math.tanh %518 : vector<8x32xf32>
    %520 = vector.extract_strided_slice %517 {offsets = [0, 32], sizes = [8, 32], strides = [1, 1]} : vector<8x96xf32> to vector<8x32xf32>
    %521 = arith.mulf %520, %504 : vector<8x32xf32>
    %522 = vector.extract_strided_slice %517 {offsets = [0, 0], sizes = [8, 32], strides = [1, 1]} : vector<8x96xf32> to vector<8x32xf32>
    %523 = arith.mulf %522, %519 : vector<8x32xf32>
    %524 = arith.addf %521, %523 : vector<8x32xf32>
    %525 = vector.extract_strided_slice %517 {offsets = [0, 64], sizes = [8, 32], strides = [1, 1]} : vector<8x96xf32> to vector<8x32xf32>
    %526 = math.tanh %524 : vector<8x32xf32>
    %527 = arith.mulf %525, %526 : vector<8x32xf32>
    %528 = arith.index_cast %507 : i32 to index
    %c0_118 = arith.constant 0 : index
    %529 = vector.load %arg15[%528, %c0_118] : memref<64x32xf32, #tpu.memory_space<vmem>>, vector<8x32xf32>
    tpu.vector_store %arg15[%528, %c0_118], %527 {strides = array<i32>} : memref<64x32xf32, #tpu.memory_space<vmem>>, vector<8x32xf32>,
    %530 = vector.broadcast %505 : i32 to vector<8x1xi32>
    %531 = arith.cmpi sgt, %9, %530 : vector<8x1xi32>
    %532 = vector.shape_cast %531 : vector<8x1xi1> to vector<8x1xi1>
    %533 = vector.broadcast %532 : vector<8x1xi1> to vector<8x32xi1>
    %534 = arith.select %533, %527, %501 : vector<8x32xi1>, vector<8x32xf32>
    %535 = vector.shape_cast %531 : vector<8x1xi1> to vector<8x1xi1>
    %536 = vector.broadcast %535 : vector<8x1xi1> to vector<8x32xi1>
    %537 = arith.select %536, %524, %504 : vector<8x32xi1>, vector<8x32xf32>
    %c8_i32_119 = arith.constant 8 : i32
    %c0_120 = arith.constant 0 : index
    %c0_121 = arith.constant 0 : index
    %538 = vector.load %arg2[%c0_120, %c0_121] : memref<64x1xf32, #tpu.memory_space<vmem>>, vector<64x1xf32>
    %c0_122 = arith.constant 0 : index
    %c0_123 = arith.constant 0 : index
    %539 = vector.load %arg14[%c0_122, %c0_123] : memref<64x32xf32, #tpu.memory_space<vmem>>, vector<64x32xf32>
    %540 = vector.broadcast %538 : vector<64x1xf32> to vector<64x32xf32>
    %541 = arith.mulf %539, %540 : vector<64x32xf32>
    %c0_124 = arith.constant 0 : index
    %c0_125 = arith.constant 0 : index
    %542 = vector.load %arg15[%c0_124, %c0_125] : memref<64x32xf32, #tpu.memory_space<vmem>>, vector<64x32xf32>
    %543 = vector.broadcast %538 : vector<64x1xf32> to vector<64x32xf32>
    %544 = arith.mulf %542, %543 : vector<64x32xf32>
    %c0_126 = arith.constant 0 : index
    %c0_127 = arith.constant 0 : index
    %545 = vector.load %arg9[%c0_126, %c0_127] : memref<32x16xf32, #tpu.memory_space<vmem>>, vector<32x16xf32>
    %cst_128 = arith.constant dense<0.000000e+00> : vector<64x16xf32>
    %546 = tpu.matmul %541, %545, %cst_128 {dimension_numbers = #tpu.dot_dimension_numbers<[1], [0], [0], [1], [0, 0, 1, 1], [], []>} : vector<64x32xf32>, vector<32x16xf32>, vector<64x16xf32> -> vector<64x16xf32>
    %c0_129 = arith.constant 0 : index
    %c0_130 = arith.constant 0 : index
    %547 = vector.load %arg10[%c0_129, %c0_130] : memref<32x16xf32, #tpu.memory_space<vmem>>, vector<32x16xf32>
    %cst_131 = arith.constant dense<0.000000e+00> : vector<64x16xf32>
    %548 = tpu.matmul %544, %547, %cst_131 {dimension_numbers = #tpu.dot_dimension_numbers<[1], [0], [0], [1], [0, 0, 1, 1], [], []>} : vector<64x32xf32>, vector<32x16xf32>, vector<64x16xf32> -> vector<64x16xf32>
    %549 = arith.addf %546, %548 : vector<64x16xf32>
    %c0_132 = arith.constant 0 : index
    %c0_133 = arith.constant 0 : index
    %550 = vector.load %arg11[%c0_132, %c0_133] : memref<1x16xf32, #tpu.memory_space<vmem>>, vector<1x16xf32>
    %551 = vector.broadcast %550 : vector<1x16xf32> to vector<64x16xf32>
    %552 = arith.addf %549, %551 : vector<64x16xf32>
    %c0_134 = arith.constant 0 : index
    %c0_135 = arith.constant 0 : index
    %553 = vector.load %arg12[%c0_134, %c0_135] : memref<64x16xf32, #tpu.memory_space<vmem>>, vector<64x16xf32>
    tpu.vector_store %arg12[%c0_134, %c0_135], %552 {strides = array<i32>} : memref<64x16xf32, #tpu.memory_space<vmem>>, vector<64x16xf32>,
    return
  }
}

</mosaic_0001>

<bundles_post_ra>
// kernel: tpu_custom_call.1
= control target key start
LH: loop header
LB: loop body
LE: loop exit
PB: predicated region body
PF: predicated region fallthrough
CT: control target
= control target key end

     0   :  { %v3076_v3 = vmov 0.0   ;;  %vm65_vm0 = vcmask 130048   ;;  %v3077_v12 = vmov 0.0|0.0   ;;  %vm3078_vm1 = vmmov 0   ;;  %s3812_s5 = inlined_call_operand.vmem [shape: f32[16,256], index: 5, kind: input, shape index: {}]   ;;  %s3813_s7 = inlined_call_operand.vmem [shape: f32[32,128], index: 7, kind: input, shape index: {}]   ;;  %s3814_s0 = inlined_call_operand.vmem [shape: f32[64,16], index: 0, kind: input, shape index: {}]   ;;  %s3815_s3 = inlined_call_operand.vmem [shape: f32[2,8,32], index: 3, kind: input, shape index: {}]   ;;  %s3816_s6 = inlined_call_operand.vmem [shape: f32[1,256], index: 6, kind: input, shape index: {}]   ;;  %s3817_s4 = inlined_call_operand.vmem [shape: f32[2,8,32], index: 4, kind: input, shape index: {}]   ;;  %s3818_s1 = inlined_call_operand.vmem [shape: s32[8,1], index: 1, kind: input, shape index: {}]   ;;  %s3819_s8 = inlined_call_operand.vmem [shape: f32[32,128], index: 8, kind: input, shape index: {}]   ;;  %s3820_s2 = inlined_call_operand.vmem [shape: f32[64,1], index: 2, kind: input, shape index: {}]   ;;  %s3821_s10 = inlined_call_operand.vmem [shape: f32[32,16], index: 10, kind: input, shape index: {}]   ;;  %s3822_s9 = inlined_call_operand.vmem [shape: f32[32,16], index: 9, kind: input, shape index: {}]   ;;  %s3823_s11 = inlined_call_operand.vmem [shape: f32[1,16], index: 11, kind: input, shape index: {}]   ;;  %s3824_s12 = inlined_call_operand.vmem [shape: f32[64,16], index: 12, kind: output, shape index: {}]  }
   0x1   :  { %v50_v0 = vld [vmem:[%s3812_s5 + $0x8] sm:$0xff]  ;;  %v52_v1 = vld [vmem:[%s3812_s5 + $0x18] sm:$0xff]  ;;  %v49_v2 = vld [vmem:[%s3812_s5] sm:$0xff]  ;;  %178 = vmatprep.mubr.f32.mxu1 %v3076_v3  ;;  %154 = vmatprep.mubr.f32.mxu0 %v3076_v3  ;;  %vm234_vm2 = vcmask 261120   ;;  %v55_v20 = vlaneseq  ;;  %v3079_v39 = vmov 0  }
   0x2   :  { %v2814_v4 = vpack.c.bf16 %v52_v1, %v50_v0  ;;  %v51_v5 = vld [vmem:[%s3812_s5 + $0x10] sm:$0xff]  ;;  %v219_v6 = vld [vmem:[%s3813_s7] sm:$0xff]  ;;  %v220_v8 = vld [vmem:[%s3813_s7 + $0x8] sm:$0xff]  ;;  %2946 = vset.pattern.permute.xlu1 %v3079_v39  ;;  %2947 = vset.pattern.permute.xlu0 %v3079_v39  ;;  %s3081_s5 = smov 64  }
   0x3   :  { %v2816_v7 = vpack.c.bf16 %v51_v5, %v49_v2  ;;  %v45_v9 = vld [vmem:[%s3814_s0 + $0x20] sm:$0xff]  ;;  %v3170_v10 = vpack.c.bf16 %v220_v8, %v219_v6  ;;  %v221_v13 = vld [vmem:[%s3813_s7 + $0x10] sm:$0xff]  ;;  %v222_v14 = vld [vmem:[%s3813_s7 + $0x18] sm:$0xff]  ;;  %v3229_v25 = vshrl.u32 %v55_v20, 7 }
   0x4   :  { %2930 = vmatprep.subr.bf16.mxu1 %v2814_v4  ;;  %2815 = vmatprep.subr.bf16.mxu0 %v2814_v4  ;;  %v41_v11 = vld [vmem:[%s3814_s0] sm:$0xff]  ;;  %v46_v15 = vld [vmem:[%s3814_s0 + $0x28] sm:$0xff]  ;;  %v3190_v16 = vpack.c.bf16 %v222_v14, %v221_v13  ;;  %v47_v17 = vld [vmem:[%s3814_s0 + $0x30] sm:$0xff] }
   0x5   :  { %2931 = vmatpush1.bf16.msra.mxu1 %v2816_v7  ;;  %2817 = vmatpush1.bf16.msra.mxu0 %v2816_v7  ;;  %v48_v18 = vld [vmem:[%s3814_s0 + $0x38] sm:$0xff]  ;;  %v228_v19 = vld [vmem:[%s3815_s3] sm:$0xff]  ;;  %v57_v28 = vsub.s32 0, %v3229_v25  ;;  %v42_v54 = vld [vmem:[%s3814_s0 + $0x8] sm:$0xff] }
   0x6   :  { %2818 = vmatprep.subr.bf16.mxu1 %v3077_v12  ;;  %2842 = vmatprep.subr.bf16.mxu0 %v3077_v12  ;;  %v3239_v29 = vld [vmem:[%s3816_s6] sm:$0x3]  ;;  %s3080_s6 = smov 32   ;;  %v43_v20 = vld [vmem:[%s3814_s0 + $0x10] sm:$0xff] }
   0x7   :  { %v3246_v32 = vrot.slane %v3239_v29, %v57_v28  ;;  %v229_v41 = vld [vmem:[%s3817_s4] sm:$0xff] }
   0x8   :  { %2439 = vmatmul.mubr.msk.f32.vlgmr.msra.gmra.mrb[0].mxu1 %vm65_vm0, %v45_v9  ;;  %2435 = vmatmul.mubr.msk.f32.vlgmr.msra.gmra.mrb[0].mxu0 %vm65_vm0, %v41_v11  ;;  %v3263_v45 = vld [vmem:[%s3818_s1] sm:$0xff] }
   0x9   :  { %2820 = vmatpush3.bf16.msra.mxu1 %v3170_v10  ;;  %184 = vmatprep.mubr.f32.mxu1 %v3076_v3  ;;  %vm342_vm3 = vcmp.gt.s32.totalorder %v3263_v45, 0  ;;  %vm463_vm5 = vcmp.gt.s32.totalorder %v3263_v45, 1  ;;  %vm581_vm7 = vcmp.gt.s32.totalorder %v3263_v45, 2  ;;  %vm699_vm9 = vcmp.gt.s32.totalorder %v3263_v45, 3 }
   0xa   :  { %2821 = vmatprep.subr.bf16.mxu1 %v3077_v12  ;;  %160 = vmatprep.mubr.f32.mxu0 %v3076_v3  ;;  %v343_v49 = vsel %vm342_vm3, 1, %v3079_v39  ;;  %v464_v6 = vsel %vm463_vm5, 1, %v3079_v39  ;;  %vm817_vm11 = vcmp.gt.s32.totalorder %v3263_v45, 4  ;;  %vm935_vm13 = vcmp.gt.s32.totalorder %v3263_v45, 5 }
   0xb   :  { %2844 = vmatpush3.bf16.msra.mxu0 %v3170_v10  ;;  %vm1053_vm15 = vcmp.gt.s32.totalorder %v3263_v45, 6  ;;  %vm1284_vm3 = vcmp.gt.s32.totalorder %v3263_v45, 7 }
   0xc   :  { %2440 = vmatmul.mubr.msk.f32.gmra.mrb[2].mxu1 %vm65_vm0, %v46_v15  ;;  %2845 = vmatprep.subr.bf16.mxu0 %v3077_v12 }
   0xd   :  { %190 = vmatprep.mubr.f32.mxu1 %v3076_v3  ;;  %2823 = vmatpush3.bf16.msra.mxu1 %v3190_v16 }
   0xe   :  { %2824 = vmatprep.subr.bf16.mxu1 %v3077_v12  ;;  %2436 = vmatmul.mubr.msk.f32.gmra.mrb[2].mxu0 %vm65_vm0, %v42_v54 }
   0xf   :  { %2847 = vmatpush3.bf16.msra.mxu0 %v3190_v16  ;;  %166 = vmatprep.mubr.f32.mxu0 %v3076_v3 }
  0x10   :  { %2441 = vmatmul.mubr.msk.f32.gmra.mrb[4].mxu1 %vm65_vm0, %v47_v17  ;;  %2854 = vmatprep.subr.bf16.mxu0 %v3077_v12 }
  0x11   :  { %196 = vmatprep.mubr.f32.mxu1 %v3076_v3 }
  0x12   :  { %2437 = vmatmul.mubr.msk.f32.gmra.mrb[4].mxu0 %vm65_vm0, %v43_v20 }
  0x13   :  { %172 = vmatprep.mubr.f32.mxu0 %v3076_v3 }
  0x14   :  { %2442 = vmatmul.mubr.msk.f32.gmra.mrb[6].mxu1 %vm65_vm0, %v48_v18 }
  0x15   :  { %2606 = vmatprep.mubr.msk.f32.mxu1 %vm3078_vm1, %v3076_v3 }
  0x18   :  { %2607 = vmatmul.mubr.msk.f32.vlgmr.msra.gmra.mrb[8].mxu1 %vm234_vm2, %v228_v19 }
  0x19   :  { %2826 = vmatpush3.bf16.msra.mxu1 %v3170_v10  ;;  %2617 = vmatprep.mubr.msk.f32.mxu1 %vm3078_vm1, %v3076_v3 }
  0x1a   :  { %2827 = vmatprep.subr.bf16.mxu1 %v3077_v12 }
  0x1d   :  { %2829 = vmatpush3.bf16.msra.mxu1 %v3190_v16 }
  0x1e   :  { %2830 = vmatprep.subr.bf16.mxu1 %v3077_v12 }
  0xdb   :  { %v3223_v21 = vpop.f32.mrb[0].mxu1  ;;  %v156_v22 = vpop.f32.mrb[0].mxu0 }
  0xdc   :  { %v3225_v23 = vpop.f32.mrb[1].mxu1  ;;  %v3227_v24 = vpop.f32.mrb[1].mxu0  ;;  %v157_v35 = vadd.f32 %v156_v22, %v3246_v32 }
  0xdf   :  { %v3231_v26 = vpop.f32.mrb[2].mxu1 }
  0xe0   :  { %v3233_v27 = vpop.f32.mrb[3].mxu1 }
  0xe1   :  { %v162_v61 = vpop.f32.mrb[2].mxu0 }
  0xe2   :  { %v3280_v62 = vpop.f32.mrb[3].mxu0  ;;  %v163_v0 = vadd.f32 %v162_v61, %v3246_v32 }
  0xe3   :  { %v3241_v30 = vpop.f32.mrb[4].mxu1 }
  0xe4   :  { %v3243_v31 = vpop.f32.mrb[5].mxu1 }
  0xe7   :  { %v3248_v33 = vpop.f32.mrb[6].mxu1 }
  0xe8   :  { %v3250_v34 = vpop.f32.mrb[7].mxu1 }
  0xeb   :  { %v304_v36 = vpop.f32.mrb[8].mxu1 }
  0xec   :  { %v308_v37 = vadd.f32 %v304_v36, %v157_v35  ;;  %v2608_v38 = vpop.f32.mrb[9].mxu1 }
  0xed   :  { %v168_v38 = vpop.f32.mrb[4].mxu0 }
  0xee   :  { %2948 = vtanh.f32 %v308_v37  ;;  %v2444_v42 = vmul.f32 -1.442695, %v308_v37 }
  0xf0   :  { %2950 = vpow2.f32 %v2444_v42  ;;  %v169_v42 = vadd.f32 %v168_v38, %v3246_v32 }
  0xf8   :  { %v2949_v40 = vpop.eup %2948 }
  0xf9   :  { %322 = vrot.lane.b32.xlu0 %v2949_v40, %s3080_s6  ;;  %v3310_v40 = vpop.f32.mrb[5].mxu0 }
  0xfa   :  { %v2951_v43 = vpop.eup %2950 }
  0xfb   :  { %v312_v44 = vadd.f32 1.0, %v2951_v43 }
  0xfd   :  { %317 = vrot.lane.b32.xlu0 %v229_v41, %s3080_s6  ;;  %2952 = vrcp.f32 %v312_v44 }
 0x107   :  { %v2953_v46 = vpop.eup %2952 }
 0x16b   :  { %v323_v47 = vpop.permute.xlu0 %322 }
 0x16c   :  { %v325_v48 = vmul.f32 %v2953_v46, %v323_v47 }
 0x16e   :  { %327 = vrot.lane.b32.xlu1 %v325_v48, %s3080_s6  ;;  %v582_v48 = vsel %vm581_vm7, 1, %v3079_v39 }
 0x16f   :  { %v318_v50 = vpop.permute.xlu0 %317 }
 0x170   :  { %v320_v51 = vmul.f32 %v2953_v46, %v318_v50 }
 0x172   :  { %345 = vperm.xlu1 %2946, %v343_v49  }
 0x176   :  { %348 = vrot.lane.b32.xlu1 %v228_v19, %s3081_s5 }
 0x1e0   :  { %v328_v52 = vpop.permute.xlu1 %327 }
 0x1e1   :  { %v330_v53 = vadd.f32 %v328_v52, %v320_v51 }
 0x1e3   :  { %2954 = vtanh.f32 %v330_v53 }
 0x1ed   :  { %v2955_v55 = vpop.eup %2954 }
 0x1ee   :  { %333 = vrot.lane.b32.xlu0 %v2955_v55, %s3080_s6 }
 0x1f1   :  { %v346_v56 = vpop.permute.xlu1 %345 }
 0x1f2   :  { %vm347_vm4 = vcmp.eq.s32.totalorder %v346_v56, 1 }
 0x1f3   :  { %v352_v15 = vsel %vm347_vm4, %v330_v53, %v318_v50 }
 0x1f5   :  { %v349_v58 = vpop.permute.xlu1 %348 }
 0x260   :  { %v334_v57 = vpop.permute.xlu0 %333 }
 0x261   :  { %v3275_v59 = vmul.f32 %v2953_v46, %v334_v57 }
 0x263   :  { %v351_v60 = vsel %vm347_vm4, %v3275_v59, %v349_v58 }
 0x264   :  { %358 = vrot.lane.b32.xlu0 %v351_v60, %s3081_s5 }
 0x2d6   :  { %v359_v63 = vpop.permute.xlu0 %358 }
 0x2d7   :  { %2618 = vmatmul.mubr.msk.f32.vlgmr.msra.gmra.mrb[10].mxu1 %vm234_vm2, %v359_v63 }
 0x2d8   :  { %2832 = vmatpush3.bf16.msra.mxu1 %v3170_v10  ;;  %2628 = vmatprep.mubr.msk.f32.mxu1 %vm3078_vm1, %v3076_v3 }
 0x2d9   :  { %2833 = vmatprep.subr.bf16.mxu1 %v3077_v12 }
 0x2dc   :  { %2835 = vmatpush3.bf16.msra.mxu1 %v3190_v16 }
 0x2dd   :  { %2836 = vmatprep.subr.bf16.mxu1 %v3077_v12 }
 0x3aa   :  { %v428_v1 = vpop.f32.mrb[10].mxu1 }
 0x3ab   :  { %v432_v2 = vadd.f32 %v428_v1, %v163_v0  ;;  %v2619_v4 = vpop.f32.mrb[11].mxu1 }
 0x3ad   :  { %2956 = vtanh.f32 %v432_v2  ;;  %v2446_v7 = vmul.f32 -1.442695, %v432_v2 }
 0x3af   :  { %2958 = vpow2.f32 %v2446_v7 }
 0x3b7   :  { %v2957_v5 = vpop.eup %2956 }
 0x3b8   :  { %442 = vrot.lane.b32.xlu1 %v2957_v5, %s3080_s6 }
 0x3b9   :  { %v2959_v8 = vpop.eup %2958 }
 0x3ba   :  { %v436_v9 = vadd.f32 1.0, %v2959_v8 }
 0x3bc   :  { %466 = vperm.xlu1 %2946, %v464_v6   ;;  %2960 = vrcp.f32 %v436_v9 }
 0x3c6   :  { %v2961_v11 = vpop.eup %2960 }
 0x3c7   :  { %v440_v17 = vmul.f32 %v2961_v11, %v352_v15 }
 0x42a   :  { %v443_v13 = vpop.permute.xlu1 %442 }
 0x42b   :  { %v445_v14 = vmul.f32 %v2961_v11, %v443_v13 }
 0x42d   :  { %447 = vrot.lane.b32.xlu0 %v445_v14, %s3080_s6  ;;  %v700_v14 = vsel %vm699_vm9, 1, %v3079_v39 }
 0x43b   :  { %v3301_v28 = vpop.permute.xlu1 %466 }
 0x43c   :  { %vm468_vm6 = vcmp.eq.s32.totalorder %v3301_v28, 1  ;;  %v2057_v28 = vld [vmem:[%s3820_s2 + $0x10] sm:$0xff] }
 0x49f   :  { %v448_v18 = vpop.permute.xlu0 %447 }
 0x4a0   :  { %v450_v19 = vadd.f32 %v448_v18, %v440_v17 }
 0x4a2   :  { %2962 = vtanh.f32 %v450_v19  ;;  %v470_v55 = vsel %vm468_vm6, %v450_v19, %v352_v15 }
 0x4ac   :  { %v2963_v22 = vpop.eup %2962 }
 0x4ad   :  { %453 = vrot.lane.b32.xlu0 %v2963_v22, %s3080_s6 }
 0x51f   :  { %v454_v35 = vpop.permute.xlu0 %453 }
 0x520   :  { %v3303_v36 = vmul.f32 %v2961_v11, %v454_v35 }
 0x522   :  { %v469_v37 = vsel %vm468_vm6, %v3303_v36, %v351_v60  ;;  %v44_v60 = vld [vmem:[%s3814_s0 + $0x18] sm:$0xff] }
 0x523   :  { %476 = vrot.lane.b32.xlu1 %v469_v37, %s3081_s5  ;;  %2438 = vmatmul.mubr.msk.f32.gmra.mrb[6].mxu0 %vm65_vm0, %v44_v60 }
 0x524   :  { %2650 = vmatprep.mubr.msk.f32.mxu0 %vm3078_vm1, %v3076_v3 }
 0x595   :  { %v477_v41 = vpop.permute.xlu1 %476 }
 0x596   :  { %2629 = vmatmul.mubr.msk.f32.vlgmr.msra.gmra.mrb[12].mxu1 %vm234_vm2, %v477_v41 }
 0x597   :  { %2838 = vmatpush3.bf16.msra.mxu1 %v3170_v10  ;;  %2639 = vmatprep.mubr.msk.f32.mxu1 %vm3078_vm1, %v3076_v3 }
 0x598   :  { %2839 = vmatprep.subr.bf16.mxu1 %v3077_v12 }
 0x59b   :  { %2841 = vmatpush3.bf16.msra.mxu1 %v3190_v16 }
 0x59c   :  { %2848 = vmatprep.subr.bf16.mxu1 %v3077_v12 }
 0x5f6   :  { %v174_v4 = vpop.f32.mrb[6].mxu0 }
 0x5f7   :  { %v3342_v5 = vpop.f32.mrb[7].mxu0  ;;  %v175_v7 = vadd.f32 %v174_v4, %v3246_v32 }
 0x669   :  { %v546_v43 = vpop.f32.mrb[12].mxu1 }
 0x66a   :  { %v550_v44 = vadd.f32 %v546_v43, %v169_v42  ;;  %v2630_v46 = vpop.f32.mrb[13].mxu1 }
 0x66c   :  { %2964 = vtanh.f32 %v550_v44  ;;  %v2448_v49 = vmul.f32 -1.442695, %v550_v44 }
 0x66e   :  { %2966 = vpow2.f32 %v2448_v49  ;;  %v181_v49 = vadd.f32 %v3223_v21, %v3246_v32 }
 0x676   :  { %v2965_v47 = vpop.eup %2964 }
 0x677   :  { %560 = vrot.lane.b32.xlu0 %v2965_v47, %s3080_s6 }
 0x678   :  { %v2967_v50 = vpop.eup %2966 }
 0x679   :  { %v554_v51 = vadd.f32 1.0, %v2967_v50 }
 0x67b   :  { %584 = vperm.xlu0 %2947, %v582_v48   ;;  %2968 = vrcp.f32 %v554_v51 }
 0x685   :  { %v2969_v52 = vpop.eup %2968 }
 0x686   :  { %v558_v56 = vmul.f32 %v2969_v52, %v470_v55 }
 0x6e9   :  { %v561_v53 = vpop.permute.xlu0 %560 }
 0x6ea   :  { %v563_v54 = vmul.f32 %v2969_v52, %v561_v53 }
 0x6ec   :  { %565 = vrot.lane.b32.xlu1 %v563_v54, %s3080_s6  ;;  %v818_v54 = vsel %vm817_vm11, 1, %v3079_v39 }
 0x6fa   :  { %v3333_v63 = vpop.permute.xlu0 %584 }
 0x6fb   :  { %vm586_vm8 = vcmp.eq.s32.totalorder %v3333_v63, 1 }
 0x75e   :  { %v566_v57 = vpop.permute.xlu1 %565 }
 0x75f   :  { %v568_v58 = vadd.f32 %v566_v57, %v558_v56 }
 0x761   :  { %2970 = vtanh.f32 %v568_v58  ;;  %v588_v35 = vsel %vm586_vm8, %v568_v58, %v470_v55 }
 0x76b   :  { %v2971_v61 = vpop.eup %2970 }
 0x76c   :  { %571 = vrot.lane.b32.xlu1 %v2971_v61, %s3080_s6 }
 0x7de   :  { %v572_v0 = vpop.permute.xlu1 %571 }
 0x7df   :  { %v3335_v1 = vmul.f32 %v2969_v52, %v572_v0 }
 0x7e1   :  { %v587_v2 = vsel %vm586_vm8, %v3335_v1, %v469_v37 }
 0x7e2   :  { %594 = vrot.lane.b32.xlu1 %v587_v2, %s3081_s5 }
 0x854   :  { %v595_v6 = vpop.permute.xlu1 %594 }
 0x855   :  { %2640 = vmatmul.mubr.msk.f32.vlgmr.msra.gmra.mrb[14].mxu1 %vm234_vm2, %v595_v6 }
 0x856   :  { %2850 = vmatpush3.bf16.msra.mxu1 %v3170_v10  ;;  %2661 = vmatprep.mubr.msk.f32.mxu1 %vm3078_vm1, %v3076_v3 }
 0x857   :  { %2851 = vmatprep.subr.bf16.mxu1 %v3077_v12 }
 0x85a   :  { %2853 = vmatpush3.bf16.msra.mxu1 %v3190_v16 }
 0x85b   :  { %2860 = vmatprep.subr.bf16.mxu1 %v3077_v12 }
 0x928   :  { %v664_v8 = vpop.f32.mrb[14].mxu1 }
 0x929   :  { %v668_v9 = vadd.f32 %v664_v8, %v175_v7  ;;  %v2641_v11 = vpop.f32.mrb[15].mxu1 }
 0x92b   :  { %2972 = vtanh.f32 %v668_v9  ;;  %v2450_v15 = vmul.f32 -1.442695, %v668_v9 }
 0x92d   :  { %2974 = vpow2.f32 %v2450_v15 }
 0x935   :  { %v2973_v13 = vpop.eup %2972 }
 0x936   :  { %678 = vrot.lane.b32.xlu0 %v2973_v13, %s3080_s6 }
 0x937   :  { %v2975_v17 = vpop.eup %2974 }
 0x938   :  { %v672_v18 = vadd.f32 1.0, %v2975_v17 }
 0x93a   :  { %702 = vperm.xlu0 %2947, %v700_v14   ;;  %2976 = vrcp.f32 %v672_v18  ;;  %v187_v14 = vadd.f32 %v3231_v26, %v3246_v32 }
 0x944   :  { %v2977_v19 = vpop.eup %2976 }
 0x945   :  { %v676_v37 = vmul.f32 %v2977_v19, %v588_v35 }
 0x9a8   :  { %v679_v20 = vpop.permute.xlu0 %678 }
 0x9a9   :  { %v681_v22 = vmul.f32 %v2977_v19, %v679_v20 }
 0x9ab   :  { %683 = vrot.lane.b32.xlu1 %v681_v22, %s3080_s6 }
 0x9b9   :  { %v3359_v43 = vpop.permute.xlu0 %702 }
 0x9ba   :  { %vm704_vm10 = vcmp.eq.s32.totalorder %v3359_v43, 1 }
 0xa1d   :  { %v684_v38 = vpop.permute.xlu1 %683 }
 0xa1e   :  { %v686_v41 = vadd.f32 %v684_v38, %v676_v37 }
 0xa20   :  { %2978 = vtanh.f32 %v686_v41  ;;  %v706_v61 = vsel %vm704_vm10, %v686_v41, %v588_v35 }
 0xa2a   :  { %v2979_v42 = vpop.eup %2978 }
 0xa2b   :  { %689 = vrot.lane.b32.xlu1 %v2979_v42, %s3080_s6 }
 0xa9d   :  { %v690_v44 = vpop.permute.xlu1 %689 }
 0xa9e   :  { %v3361_v46 = vmul.f32 %v2977_v19, %v690_v44 }
 0xaa0   :  { %v705_v47 = vsel %vm704_vm10, %v3361_v46, %v587_v2 }
 0xaa1   :  { %712 = vrot.lane.b32.xlu0 %v705_v47, %s3081_s5 }
 0xb13   :  { %v713_v48 = vpop.permute.xlu0 %712 }
 0xb14   :  { %2651 = vmatmul.mubr.msk.f32.vlgmr.msra.gmra.mrb[8].mxu0 %vm234_vm2, %v713_v48 }
 0xb15   :  { %2856 = vmatpush3.bf16.msra.mxu0 %v3170_v10  ;;  %2672 = vmatprep.mubr.msk.f32.mxu0 %vm3078_vm1, %v3076_v3 }
 0xb16   :  { %2857 = vmatprep.subr.bf16.mxu0 %v3077_v12 }
 0xb19   :  { %2859 = vmatpush3.bf16.msra.mxu0 %v3190_v16 }
 0xb1a   :  { %2866 = vmatprep.subr.bf16.mxu0 %v3077_v12 }
 0xbe7   :  { %v782_v50 = vpop.f32.mrb[8].mxu0 }
 0xbe8   :  { %v786_v51 = vadd.f32 %v782_v50, %v181_v49  ;;  %v2652_v52 = vpop.f32.mrb[9].mxu0 }
 0xbe9   :  { %v223_v52 = vld [vmem:[%s3819_s8] sm:$0xff] }
 0xbea   :  { %2980 = vtanh.f32 %v786_v51  ;;  %v2452_v55 = vmul.f32 -1.442695, %v786_v51 }
 0xbec   :  { %2982 = vpow2.f32 %v2452_v55  ;;  %v225_v55 = vld [vmem:[%s3819_s8 + $0x10] sm:$0xff] }
 0xbf4   :  { %v2981_v53 = vpop.eup %2980 }
 0xbf5   :  { %796 = vrot.lane.b32.xlu1 %v2981_v53, %s3080_s6  ;;  %v224_v53 = vld [vmem:[%s3819_s8 + $0x8] sm:$0xff] }
 0xbf6   :  { %v2983_v56 = vpop.eup %2982 }
 0xbf7   :  { %v790_v57 = vadd.f32 1.0, %v2983_v56  ;;  %v226_v56 = vld [vmem:[%s3819_s8 + $0x18] sm:$0xff] }
 0xbf9   :  { %820 = vperm.xlu1 %2946, %v818_v54   ;;  %2984 = vrcp.f32 %v790_v57  ;;  %v3433_v54 = vpack.c.bf16 %v224_v53, %v223_v52 }
 0xc03   :  { %v2985_v58 = vpop.eup %2984 }
 0xc04   :  { %v794_v0 = vmul.f32 %v2985_v58, %v706_v61 }
 0xc67   :  { %v797_v60 = vpop.permute.xlu1 %796 }
 0xc68   :  { %v799_v21 = vmul.f32 %v2985_v58, %v797_v60  ;;  %v2459_v60 = vld [vmem:[%s3815_s3 + $0x8] sm:$0xff] }
 0xc6a   :  { %801 = vrot.lane.b32.xlu0 %v799_v21, %s3080_s6  ;;  %v193_v21 = vadd.f32 %v3241_v30, %v3246_v32 }
 0xc78   :  { %v3384_v7 = vpop.permute.xlu1 %820 }
 0xc79   :  { %vm822_vm12 = vcmp.eq.s32.totalorder %v3384_v7, 1 }
 0xcdc   :  { %v802_v2 = vpop.permute.xlu0 %801 }
 0xcdd   :  { %v804_v4 = vadd.f32 %v802_v2, %v794_v0  ;;  %v61_v0 = vsub.s32 1, %v3229_v25  ;;  %v2460_v25 = vld [vmem:[%s3817_s4 + $0x8] sm:$0xff] }
 0xcdf   :  { %2986 = vtanh.f32 %v804_v4  ;;  %v3408_v38 = vsel %vm822_vm12, %v804_v4, %v706_v61 }
 0xce9   :  { %v2987_v6 = vpop.eup %2986 }
 0xcea   :  { %807 = vrot.lane.b32.xlu0 %v2987_v6, %s3080_s6  ;;  %v3464_v6 = vrot.slane %v3239_v29, %v61_v0  ;;  %v1054_v29 = vsel %vm1053_vm15, 1, %v3079_v39 }
 0xcec   :  { %v171_v7 = vadd.f32 %v3310_v40, %v3464_v6  ;;  %v165_v43 = vadd.f32 %v3280_v62, %v3464_v6 }
 0xd5c   :  { %v808_v8 = vpop.permute.xlu0 %807 }
 0xd5d   :  { %v3386_v9 = vmul.f32 %v2985_v58, %v808_v8  ;;  %v3443_v58 = vpack.c.bf16 %v226_v56, %v225_v55  ;;  %v201_v8 = vadd.f32 %v3250_v34, %v3464_v6  ;;  %v1285_v34 = vsel %vm1284_vm3, 1, %v3079_v39 }
 0xd5f   :  { %v823_v11 = vsel %vm822_vm12, %v3386_v9, %v705_v47 }
 0xd60   :  { %830 = vrot.lane.b32.xlu1 %v823_v11, %s3081_s5 }
 0xdd2   :  { %v831_v13 = vpop.permute.xlu1 %830 }
 0xdd3   :  { %2662 = vmatmul.mubr.msk.f32.vlgmr.msra.gmra.mrb[16].mxu1 %vm234_vm2, %v831_v13 }
 0xdd4   :  { %2862 = vmatpush3.bf16.msra.mxu1 %v3170_v10  ;;  %2683 = vmatprep.mubr.msk.f32.mxu1 %vm3078_vm1, %v3076_v3  ;;  %v936_v10 = vsel %vm935_vm13, 1, %v3079_v39 }
 0xdd5   :  { %2863 = vmatprep.subr.bf16.mxu1 %v3077_v12 }
 0xdd8   :  { %2865 = vmatpush3.bf16.msra.mxu1 %v3190_v16 }
 0xdd9   :  { %2872 = vmatprep.subr.bf16.mxu1 %v3077_v12 }
 0xea6   :  { %v900_v15 = vpop.f32.mrb[16].mxu1 }
 0xea7   :  { %v904_v17 = vadd.f32 %v900_v15, %v187_v14  ;;  %v2663_v18 = vpop.f32.mrb[17].mxu1 }
 0xea9   :  { %2988 = vtanh.f32 %v904_v17  ;;  %v2454_v20 = vmul.f32 -1.442695, %v904_v17 }
 0xeab   :  { %2990 = vpow2.f32 %v2454_v20 }
 0xeb3   :  { %v2989_v19 = vpop.eup %2988 }
 0xeb4   :  { %914 = vrot.lane.b32.xlu0 %v2989_v19, %s3080_s6 }
 0xeb5   :  { %v2991_v16 = vpop.eup %2990 }
 0xeb6   :  { %v908_v22 = vadd.f32 1.0, %v2991_v16 }
 0xeb8   :  { %938 = vperm.xlu0 %2947, %v936_v10   ;;  %2992 = vrcp.f32 %v908_v22 }
 0xec2   :  { %v2993_v35 = vpop.eup %2992 }
 0xec3   :  { %v912_v41 = vmul.f32 %v2993_v35, %v3408_v38 }
 0xf26   :  { %v915_v37 = vpop.permute.xlu0 %914 }
 0xf27   :  { %v917_v26 = vmul.f32 %v2993_v35, %v915_v37 }
 0xf29   :  { %919 = vrot.lane.b32.xlu1 %v917_v26, %s3080_s6 }
 0xf37   :  { %v3415_v48 = vpop.permute.xlu0 %938 }
 0xf38   :  { %vm940_vm14 = vcmp.eq.s32.totalorder %v3415_v48, 1  ;;  %v177_v48 = vadd.f32 %v3342_v5, %v3464_v6 }
 0xf9b   :  { %v920_v42 = vpop.permute.xlu1 %919 }
 0xf9c   :  { %v3411_v44 = vadd.f32 %v920_v42, %v912_v41 }
 0xf9e   :  { %2994 = vtanh.f32 %v3411_v44  ;;  %v3485_v41 = vsel %vm940_vm14, %v3411_v44, %v3408_v38 }
 0xfa8   :  { %v2995_v47 = vpop.eup %2994 }
 0xfa9   :  { %925 = vrot.lane.b32.xlu1 %v2995_v47, %s3080_s6 }
0x101b   :  { %v926_v49 = vpop.permute.xlu1 %925 }
0x101c   :  { %v3417_v50 = vmul.f32 %v2993_v35, %v926_v49 }
0x101e   :  { %v3423_v51 = vsel %vm940_vm14, %v3417_v50, %v823_v11 }
0x101f   :  { %948 = vrot.lane.b32.xlu0 %v3423_v51, %s3081_s5 }
0x1091   :  { %v949_v57 = vpop.permute.xlu0 %948 }
0x1092   :  { %2673 = vmatmul.mubr.msk.f32.vlgmr.msra.gmra.mrb[10].mxu0 %vm234_vm2, %v949_v57 }
0x1093   :  { %2868 = vmatpush3.bf16.msra.mxu0 %v3433_v54  ;;  %2694 = vmatprep.mubr.msk.f32.mxu0 %vm3078_vm1, %v3076_v3 }
0x1094   :  { %2869 = vmatprep.subr.bf16.mxu0 %v3077_v12 }
0x1097   :  { %2871 = vmatpush3.bf16.msra.mxu0 %v3443_v58 }
0x1098   :  { %2878 = vmatprep.subr.bf16.mxu0 %v3077_v12 }
0x109a   :  { %2695 = vmatmul.mubr.msk.f32.vlgmr.msra.gmra.mrb[12].mxu0 %vm234_vm2, %v2459_v60 }
0x109b   :  { %2880 = vmatpush3.bf16.msra.mxu0 %v3433_v54  ;;  %2716 = vmatprep.mubr.msk.f32.mxu0 %vm3078_vm1, %v3076_v3 }
0x109c   :  { %2881 = vmatprep.subr.bf16.mxu0 %v3077_v12 }
0x109f   :  { %2883 = vmatpush3.bf16.msra.mxu0 %v3443_v58 }
0x10a0   :  { %2890 = vmatprep.subr.bf16.mxu0 %v3077_v12 }
0x1165   :  { %v1018_v61 = vpop.f32.mrb[10].mxu0 }
0x1166   :  { %v1022_v2 = vadd.f32 %v1018_v61, %v193_v21  ;;  %v2674_v4 = vpop.f32.mrb[11].mxu0 }
0x1168   :  { %2996 = vtanh.f32 %v1022_v2  ;;  %v2456_v17 = vmul.f32 -1.442695, %v1022_v2 }
0x116d   :  { %v1245_v11 = vpop.f32.mrb[12].mxu0 }
0x116e   :  { %v1249_v13 = vadd.f32 %v1245_v11, %v201_v8  ;;  %v2696_v14 = vpop.f32.mrb[13].mxu0 }
0x116f   :  { %v199_v14 = vadd.f32 %v3248_v33, %v3246_v32 }
0x1170   :  { %2998 = vtanh.f32 %v1249_v13  ;;  %v2462_v18 = vmul.f32 -1.442695, %v1249_v13 }
0x1171   :  { %3000 = vpow2.f32 %v2456_v17 }
0x1172   :  { %v2997_v15 = vpop.eup %2996  ;;  %3002 = vpow2.f32 %v2462_v18 }
0x1173   :  { %1032 = vrot.lane.b32.xlu1 %v2997_v15, %s3080_s6 }
0x117a   :  { %v2999_v30 = vpop.eup %2998 }
0x117b   :  { %1263 = vrot.lane.b32.xlu0 %v2999_v30, %s3080_s6  ;;  %v3001_v19 = vpop.eup %3000 }
0x117c   :  { %v1026_v10 = vadd.f32 1.0, %v3001_v19  ;;  %v3003_v20 = vpop.eup %3002 }
0x117d   :  { %v1253_v16 = vadd.f32 1.0, %v3003_v20 }
0x117e   :  { %3004 = vrcp.f32 %v1026_v10 }
0x117f   :  { %1258 = vrot.lane.b32.xlu0 %v2460_v25, %s3080_s6  ;;  %3006 = vrcp.f32 %v1253_v16 }
0x1183   :  { %1056 = vperm.xlu0 %2947, %v1054_v29   ;;  %v195_v29 = vadd.f32 %v3243_v31, %v3464_v6 }
0x1187   :  { %1287 = vperm.xlu0 %2947, %v1285_v34  }
0x1188   :  { %v3005_v22 = vpop.eup %3004 }
0x1189   :  { %v3007_v45 = vpop.eup %3006  ;;  %v1030_v42 = vmul.f32 %v3005_v22, %v3485_v41 }
0x118b   :  { %1290 = vrot.lane.b32.xlu0 %v2459_v60, %s3081_s5 }
0x11e5   :  { %v1033_v35 = vpop.permute.xlu1 %1032 }
0x11e6   :  { %v1035_v37 = vmul.f32 %v3005_v22, %v1033_v35 }
0x11e8   :  { %1037 = vrot.lane.b32.xlu1 %v1035_v37, %s3080_s6 }
0x11ed   :  { %v1264_v39 = vpop.permute.xlu0 %1263 }
0x11ee   :  { %v1266_v26 = vmul.f32 %v3007_v45, %v1264_v39 }
0x11f0   :  { %1268 = vrot.lane.b32.xlu1 %v1266_v26, %s3080_s6 }
0x11f1   :  { %v1259_v52 = vpop.permute.xlu0 %1258 }
0x11f2   :  { %v1261_v53 = vmul.f32 %v3007_v45, %v1259_v52 }
0x1202   :  { %v3493_v38 = vpop.permute.xlu0 %1056 }
0x1203   :  { %vm1058_vm4 = vcmp.eq.s32.totalorder %v3493_v38, 1  ;;  %v2062_v38 = vld [vmem:[%s3820_s2 + $0x38] sm:$0xff] }
0x1206   :  { %v1288_v0 = vpop.permute.xlu0 %1287 }
0x1207   :  { %vm1289_vm5 = vcmp.eq.s32.totalorder %v1288_v0, 1 }
0x120a   :  { %v1291_v4 = vpop.permute.xlu0 %1290 }
0x125a   :  { %v1038_v47 = vpop.permute.xlu1 %1037 }
0x125b   :  { %v3488_v49 = vadd.f32 %v1038_v47, %v1030_v42 }
0x125d   :  { %3008 = vtanh.f32 %v3488_v49 }
0x1262   :  { %v1269_v55 = vpop.permute.xlu1 %1268 }
0x1263   :  { %v1271_v56 = vadd.f32 %v1269_v55, %v1261_v53 }
0x1265   :  { %3010 = vtanh.f32 %v1271_v56  ;;  %v1294_v35 = vsel %vm1289_vm5, %v1271_v56, %v1259_v52  ;;  %v189_v52 = vadd.f32 %v3233_v27, %v3464_v6 }
0x1267   :  { %v3009_v57 = vpop.eup %3008 }
0x1268   :  { %1043 = vrot.lane.b32.xlu1 %v3009_v57, %s3080_s6 }
0x126f   :  { %v3011_v60 = vpop.eup %3010 }
0x1270   :  { %1274 = vrot.lane.b32.xlu1 %v3011_v60, %s3080_s6 }
0x12da   :  { %v1044_v44 = vpop.permute.xlu1 %1043 }
0x12db   :  { %v3495_v21 = vmul.f32 %v3005_v22, %v1044_v44 }
0x12dd   :  { %v1059_v61 = vsel %vm1058_vm4, %v3495_v21, %v3423_v51 }
0x12de   :  { %1066 = vrot.lane.b32.xlu1 %v1059_v61, %s3081_s5 }
0x12e2   :  { %v1275_v2 = vpop.permute.xlu1 %1274 }
0x12e3   :  { %v3503_v8 = vmul.f32 %v3007_v45, %v1275_v2 }
0x12e5   :  { %v1293_v11 = vsel %vm1289_vm5, %v3503_v8, %v1291_v4 }
0x12e6   :  { %1297 = vrot.lane.b32.xlu0 %v1293_v11, %s3081_s5 }
0x1350   :  { %v1067_v13 = vpop.permute.xlu1 %1066 }
0x1351   :  { %2684 = vmatmul.mubr.msk.f32.vlgmr.msra.gmra.mrb[18].mxu1 %vm234_vm2, %v1067_v13 }
0x1352   :  { %2874 = vmatpush3.bf16.msra.mxu1 %v3433_v54  ;;  %2705 = vmatprep.mubr.msk.f32.mxu1 %vm3078_vm1, %v3076_v3 }
0x1353   :  { %2875 = vmatprep.subr.bf16.mxu1 %v3077_v12 }
0x1356   :  { %2877 = vmatpush3.bf16.msra.mxu1 %v3443_v58 }
0x1357   :  { %2884 = vmatprep.subr.bf16.mxu1 %v3077_v12 }
0x1358   :  { %v1298_v51 = vpop.permute.xlu0 %1297 }
0x1359   :  { %2706 = vmatmul.mubr.msk.f32.vlgmr.msra.gmra.mrb[20].mxu1 %vm234_vm2, %v1298_v51 }
0x135a   :  { %2886 = vmatpush3.bf16.msra.mxu1 %v3433_v54  ;;  %2727 = vmatprep.mubr.msk.f32.mxu1 %vm3078_vm1, %v3076_v3 }
0x135b   :  { %2887 = vmatprep.subr.bf16.mxu1 %v3077_v12 }
0x135e   :  { %2889 = vmatpush3.bf16.msra.mxu1 %v3443_v58 }
0x135f   :  { %2896 = vmatprep.subr.bf16.mxu1 %v3077_v12 }
0x1424   :  { %v1136_v15 = vpop.f32.mrb[18].mxu1 }
0x1425   :  { %v3524_v30 = vadd.f32 %v1136_v15, %v199_v14  ;;  %v2685_v25 = vpop.f32.mrb[19].mxu1 }
0x142c   :  { %v1367_v34 = vpop.f32.mrb[20].mxu1 }
0x142d   :  { %v1371_v17 = vadd.f32 %v1367_v34, %v195_v29  ;;  %v2707_v18 = vpop.f32.mrb[21].mxu1 }
0x142e   :  { %v183_v18 = vadd.f32 %v3225_v23, %v3464_v6 }
0x142f   :  { %3012 = vtanh.f32 %v1371_v17  ;;  %v2464_v10 = vmul.f32 -1.442695, %v1371_v17 }
0x1431   :  { %3014 = vpow2.f32 %v2464_v10 }
0x1439   :  { %v3013_v19 = vpop.eup %3012 }
0x143a   :  { %1381 = vrot.lane.b32.xlu1 %v3013_v19, %s3080_s6 }
0x143b   :  { %v3015_v20 = vpop.eup %3014 }
0x143c   :  { %v1375_v16 = vadd.f32 1.0, %v3015_v20 }
0x143e   :  { %3016 = vrcp.f32 %v1375_v16 }
0x1448   :  { %v3017_v32 = vpop.eup %3016 }
0x1449   :  { %v1379_v31 = vmul.f32 %v3017_v32, %v1294_v35 }
0x14ac   :  { %v1382_v33 = vpop.permute.xlu1 %1381 }
0x14ad   :  { %v1384_v22 = vmul.f32 %v3017_v32, %v1382_v33 }
0x14af   :  { %1386 = vrot.lane.b32.xlu0 %v1384_v22, %s3080_s6 }
0x1521   :  { %v1387_v37 = vpop.permute.xlu0 %1386 }
0x1522   :  { %v1389_v45 = vadd.f32 %v1387_v37, %v1379_v31 }
0x1524   :  { %3018 = vtanh.f32 %v1389_v45  ;;  %v1403_v27 = vsel %vm1058_vm4, %v1389_v45, %v1294_v35 }
0x152e   :  { %v3019_v39 = vpop.eup %3018 }
0x152f   :  { %1392 = vrot.lane.b32.xlu1 %v3019_v39, %s3080_s6 }
0x15a1   :  { %v1393_v26 = vpop.permute.xlu1 %1392 }
0x15a2   :  { %v3532_v42 = vmul.f32 %v3017_v32, %v1393_v26 }
0x15a4   :  { %v1402_v47 = vsel %vm1058_vm4, %v3532_v42, %v1293_v11 }
0x15a5   :  { %1406 = vrot.lane.b32.xlu0 %v1402_v47, %s3081_s5 }
0x1617   :  { %v1407_v53 = vpop.permute.xlu0 %1406 }
0x1618   :  { %2717 = vmatmul.mubr.msk.f32.vlgmr.msra.gmra.mrb[14].mxu0 %vm234_vm2, %v1407_v53 }
0x1619   :  { %2892 = vmatpush3.bf16.msra.mxu0 %v3433_v54  ;;  %2738 = vmatprep.mubr.msk.f32.mxu0 %vm3078_vm1, %v3076_v3 }
0x161a   :  { %2893 = vmatprep.subr.bf16.mxu0 %v3077_v12 }
0x161d   :  { %2895 = vmatpush3.bf16.msra.mxu0 %v3443_v58 }
0x161e   :  { %2902 = vmatprep.subr.bf16.mxu0 %v3077_v12 }
0x16eb   :  { %v1476_v55 = vpop.f32.mrb[14].mxu0 }
0x16ec   :  { %v1480_v56 = vadd.f32 %v1476_v55, %v189_v52  ;;  %v2718_v57 = vpop.f32.mrb[15].mxu0 }
0x16ee   :  { %3020 = vtanh.f32 %v1480_v56  ;;  %v2466_v44 = vmul.f32 -1.442695, %v1480_v56 }
0x16f0   :  { %3022 = vpow2.f32 %v2466_v44 }
0x16f8   :  { %v3021_v60 = vpop.eup %3020 }
0x16f9   :  { %1490 = vrot.lane.b32.xlu1 %v3021_v60, %s3080_s6 }
0x16fa   :  { %v3023_v61 = vpop.eup %3022 }
0x16fb   :  { %v1484_v0 = vadd.f32 1.0, %v3023_v61 }
0x16fd   :  { %3024 = vrcp.f32 %v1484_v0 }
0x1707   :  { %v3025_v2 = vpop.eup %3024 }
0x1708   :  { %v1488_v13 = vmul.f32 %v3025_v2, %v1403_v27 }
0x176b   :  { %v1491_v4 = vpop.permute.xlu1 %1490 }
0x176c   :  { %v1493_v11 = vmul.f32 %v3025_v2, %v1491_v4 }
0x176e   :  { %1495 = vrot.lane.b32.xlu0 %v1493_v11, %s3080_s6 }
0x17e0   :  { %v1496_v51 = vpop.permute.xlu0 %1495 }
0x17e1   :  { %v1498_v14 = vadd.f32 %v1496_v51, %v1488_v13 }
0x17e3   :  { %3026 = vtanh.f32 %v1498_v14  ;;  %v1512_v23 = vsel %vm940_vm14, %v1498_v14, %v1403_v27 }
0x17ed   :  { %v3027_v15 = vpop.eup %3026 }
0x17ee   :  { %1501 = vrot.lane.b32.xlu1 %v3027_v15, %s3080_s6 }
0x1860   :  { %v1502_v25 = vpop.permute.xlu1 %1501 }
0x1861   :  { %v3552_v29 = vmul.f32 %v3025_v2, %v1502_v25 }
0x1863   :  { %v1511_v34 = vsel %vm940_vm14, %v3552_v29, %v1402_v47 }
0x1864   :  { %1515 = vrot.lane.b32.xlu0 %v1511_v34, %s3081_s5 }
0x18d6   :  { %v1516_v17 = vpop.permute.xlu0 %1515 }
0x18d7   :  { %2728 = vmatmul.mubr.msk.f32.vlgmr.msra.gmra.mrb[22].mxu1 %vm234_vm2, %v1516_v17 }
0x18d8   :  { %2898 = vmatpush3.bf16.msra.mxu1 %v3433_v54  ;;  %2749 = vmatprep.mubr.msk.f32.mxu1 %vm3078_vm1, %v3076_v3 }
0x18d9   :  { %2899 = vmatprep.subr.bf16.mxu1 %v3077_v12 }
0x18dc   :  { %2901 = vmatpush3.bf16.msra.mxu1 %v3443_v58 }
0x18dd   :  { %2908 = vmatprep.subr.bf16.mxu1 %v3077_v12 }
0x19aa   :  { %v1585_v19 = vpop.f32.mrb[22].mxu1 }
0x19ab   :  { %v1589_v10 = vadd.f32 %v1585_v19, %v183_v18  ;;  %v2729_v20 = vpop.f32.mrb[23].mxu1 }
0x19ad   :  { %3028 = vtanh.f32 %v1589_v10  ;;  %v2468_v32 = vmul.f32 -1.442695, %v1589_v10 }
0x19af   :  { %3030 = vpow2.f32 %v2468_v32 }
0x19b7   :  { %v3029_v16 = vpop.eup %3028 }
0x19b8   :  { %1599 = vrot.lane.b32.xlu1 %v3029_v16, %s3080_s6 }
0x19b9   :  { %v3031_v33 = vpop.eup %3030 }
0x19ba   :  { %v1593_v22 = vadd.f32 1.0, %v3031_v33 }
0x19bc   :  { %3032 = vrcp.f32 %v1593_v22 }
0x19c6   :  { %v3033_v35 = vpop.eup %3032 }
0x19c7   :  { %v1597_v45 = vmul.f32 %v3033_v35, %v1512_v23 }
0x1a2a   :  { %v1600_v31 = vpop.permute.xlu1 %1599 }
0x1a2b   :  { %v1602_v37 = vmul.f32 %v3033_v35, %v1600_v31 }
0x1a2d   :  { %1604 = vrot.lane.b32.xlu0 %v1602_v37, %s3080_s6 }
0x1a9f   :  { %v1605_v39 = vpop.permute.xlu0 %1604 }
0x1aa0   :  { %v1607_v26 = vadd.f32 %v1605_v39, %v1597_v45 }
0x1aa2   :  { %3034 = vtanh.f32 %v1607_v26  ;;  %v1621_v5 = vsel %vm822_vm12, %v1607_v26, %v1512_v23 }
0x1aac   :  { %v3035_v47 = vpop.eup %3034 }
0x1aad   :  { %1610 = vrot.lane.b32.xlu1 %v3035_v47, %s3080_s6 }
0x1b1f   :  { %v1611_v53 = vpop.permute.xlu1 %1610 }
0x1b20   :  { %v3572_v52 = vmul.f32 %v3033_v35, %v1611_v53 }
0x1b22   :  { %v1620_v55 = vsel %vm822_vm12, %v3572_v52, %v1511_v34 }
0x1b23   :  { %1624 = vrot.lane.b32.xlu0 %v1620_v55, %s3081_s5 }
0x1b95   :  { %v1625_v56 = vpop.permute.xlu0 %1624 }
0x1b96   :  { %2739 = vmatmul.mubr.msk.f32.vlgmr.msra.gmra.mrb[16].mxu0 %vm234_vm2, %v1625_v56 }
0x1b97   :  { %2904 = vmatpush3.bf16.msra.mxu0 %v3433_v54  ;;  %2760 = vmatprep.mubr.msk.f32.mxu0 %vm3078_vm1, %v3076_v3 }
0x1b98   :  { %2905 = vmatprep.subr.bf16.mxu0 %v3077_v12 }
0x1b9b   :  { %2907 = vmatpush3.bf16.msra.mxu0 %v3443_v58 }
0x1c69   :  { %v1694_v57 = vpop.f32.mrb[16].mxu0 }
0x1c6a   :  { %v1698_v60 = vadd.f32 %v1694_v57, %v177_v48  ;;  %v2740_v44 = vpop.f32.mrb[17].mxu0 }
0x1c6c   :  { %3036 = vtanh.f32 %v1698_v60  ;;  %v2470_v0 = vmul.f32 -1.442695, %v1698_v60 }
0x1c6e   :  { %3038 = vpow2.f32 %v2470_v0 }
0x1c76   :  { %v3037_v61 = vpop.eup %3036 }
0x1c77   :  { %1708 = vrot.lane.b32.xlu1 %v3037_v61, %s3080_s6 }
0x1c78   :  { %v3039_v2 = vpop.eup %3038 }
0x1c79   :  { %v1702_v4 = vadd.f32 1.0, %v3039_v2 }
0x1c7b   :  { %3040 = vrcp.f32 %v1702_v4 }
0x1c85   :  { %v3041_v11 = vpop.eup %3040 }
0x1c86   :  { %v1706_v51 = vmul.f32 %v3041_v11, %v1621_v5 }
0x1ce9   :  { %v1709_v27 = vpop.permute.xlu1 %1708 }
0x1cea   :  { %v1711_v13 = vmul.f32 %v3041_v11, %v1709_v27 }
0x1cec   :  { %1713 = vrot.lane.b32.xlu0 %v1711_v13, %s3080_s6 }
0x1d5e   :  { %v1714_v14 = vpop.permute.xlu0 %1713 }
0x1d5f   :  { %v1716_v15 = vadd.f32 %v1714_v14, %v1706_v51 }
0x1d61   :  { %3042 = vtanh.f32 %v1716_v15  ;;  %v1730_v40 = vsel %vm704_vm10, %v1716_v15, %v1621_v5  ;;  %v2458_v15 = vmul.f32 -1.442695, %v3524_v30 }
0x1d6b   :  { %v3043_v25 = vpop.eup %3042 }
0x1d6c   :  { %1719 = vrot.lane.b32.xlu1 %v3043_v25, %s3080_s6 }
0x1dde   :  { %v1720_v34 = vpop.permute.xlu1 %1719 }
0x1ddf   :  { %v3591_v17 = vmul.f32 %v3041_v11, %v1720_v34 }
0x1de1   :  { %v1729_v18 = vsel %vm704_vm10, %v3591_v17, %v1620_v55 }
0x1de2   :  { %1733 = vrot.lane.b32.xlu0 %v1729_v18, %s3081_s5 }
0x1e54   :  { %v1734_v19 = vpop.permute.xlu0 %1733 }
0x1e55   :  { %2750 = vmatmul.mubr.msk.f32.vlgmr.msra.gmra.mrb[24].mxu1 %vm234_vm2, %v1734_v19 }
0x1e56   :  { %2910 = vmatpush3.bf16.msra.mxu1 %v3433_v54  ;;  %2771 = vmatprep.mubr.msk.f32.mxu1 %vm3078_vm1, %v3076_v3 }
0x1e57   :  { %2911 = vmatprep.subr.bf16.mxu1 %v3077_v12 }
0x1e5a   :  { %2913 = vmatpush3.bf16.msra.mxu1 %v3443_v58 }
0x1f28   :  { %v1803_v10 = vpop.f32.mrb[24].mxu1 }
0x1f29   :  { %v1807_v20 = vadd.f32 %v1803_v10, %v171_v7  ;;  %v2751_v16 = vpop.f32.mrb[25].mxu1 }
0x1f2b   :  { %3044 = vtanh.f32 %v1807_v20  ;;  %v2472_v33 = vmul.f32 -1.442695, %v1807_v20  ;;  %v1060_v20 = vsel %vm1058_vm4, %v3488_v49, %v3485_v41  ;;  %v2058_v41 = vld [vmem:[%s3820_s2 + $0x18] sm:$0xff]  ;;  %v2060_v49 = vld [vmem:[%s3820_s2 + $0x28] sm:$0xff] }
0x1f2d   :  { %3046 = vpow2.f32 %v2472_v33 }
0x1f35   :  { %v3045_v32 = vpop.eup %3044 }
0x1f36   :  { %1817 = vrot.lane.b32.xlu1 %v3045_v32, %s3080_s6 }
0x1f37   :  { %v3047_v54 = vpop.eup %3046 }
0x1f38   :  { %v1811_v22 = vadd.f32 1.0, %v3047_v54  ;;  %v2056_v54 = vld [vmem:[%s3820_s2 + $0x8] sm:$0xff] }
0x1f3a   :  { %3048 = vrcp.f32 %v1811_v22 }
0x1f44   :  { %v3049_v3 = vpop.eup %3048 }
0x1f45   :  { %v1815_v58 = vmul.f32 %v3049_v3, %v1730_v40 }
0x1fa8   :  { %v1818_v35 = vpop.permute.xlu1 %1817 }
0x1fa9   :  { %v1820_v12 = vmul.f32 %v3049_v3, %v1818_v35 }
0x1fab   :  { %1822 = vrot.lane.b32.xlu0 %v1820_v12, %s3080_s6 }
0x201d   :  { %v1823_v31 = vpop.permute.xlu0 %1822 }
0x201e   :  { %v1825_v37 = vadd.f32 %v1823_v31, %v1815_v58 }
0x2020   :  { %3050 = vtanh.f32 %v1825_v37  ;;  %v3623_v62 = vsel %vm586_vm8, %v1825_v37, %v1730_v40 }
0x202a   :  { %v3051_v23 = vpop.eup %3050 }
0x202b   :  { %1828 = vrot.lane.b32.xlu1 %v3051_v23, %s3080_s6 }
0x209d   :  { %v1829_v45 = vpop.permute.xlu1 %1828 }
0x209e   :  { %v3610_v39 = vmul.f32 %v3049_v3, %v1829_v45 }
0x20a0   :  { %v1838_v26 = vsel %vm586_vm8, %v3610_v39, %v1729_v18 }
0x20a1   :  { %1842 = vrot.lane.b32.xlu0 %v1838_v26, %s3081_s5 }
0x2113   :  { %v1843_v47 = vpop.permute.xlu0 %1842 }
0x2114   :  { %2761 = vmatmul.mubr.msk.f32.vlgmr.msra.gmra.mrb[18].mxu0 %vm234_vm2, %v1843_v47 }
0x21e7   :  { %v1912_v53 = vpop.f32.mrb[18].mxu0 }
0x21e8   :  { %v1916_v55 = vadd.f32 %v1912_v53, %v165_v43  ;;  %v2762_v56 = vpop.f32.mrb[19].mxu0 }
0x21ea   :  { %3052 = vtanh.f32 %v1916_v55  ;;  %v2474_v57 = vmul.f32 -1.442695, %v1916_v55 }
0x21ec   :  { %3054 = vpow2.f32 %v2474_v57 }
0x21f4   :  { %v3053_v48 = vpop.eup %3052 }
0x21f5   :  { %1926 = vrot.lane.b32.xlu1 %v3053_v48, %s3080_s6 }
0x21f6   :  { %v3055_v60 = vpop.eup %3054 }
0x21f7   :  { %v1920_v44 = vadd.f32 1.0, %v3055_v60 }
0x21f9   :  { %3056 = vrcp.f32 %v1920_v44 }
0x2203   :  { %v3057_v61 = vpop.eup %3056 }
0x2204   :  { %v1924_v4 = vmul.f32 %v3057_v61, %v3623_v62 }
0x2267   :  { %v1927_v0 = vpop.permute.xlu1 %1926 }
0x2268   :  { %v1929_v2 = vmul.f32 %v3057_v61, %v1927_v0 }
0x226a   :  { %1931 = vrot.lane.b32.xlu0 %v1929_v2, %s3080_s6  ;;  %v2055_v2 = vld [vmem:[%s3820_s2] sm:$0xff] }
0x22dc   :  { %v1932_v11 = vpop.permute.xlu0 %1931 }
0x22dd   :  { %v3626_v27 = vadd.f32 %v1932_v11, %v1924_v4  ;;  %v2140_v4 = vld [vmem:[%s3821_s10 + $0x8] sm:$0xff] }
0x22df   :  { %3058 = vtanh.f32 %v3626_v27  ;;  %v1948_v57 = vsel %vm468_vm6, %v3626_v27, %v3623_v62  ;;  %v2139_v62 = vld [vmem:[%s3821_s10] sm:$0xff]  ;;  %v2142_v27 = vld [vmem:[%s3821_s10 + $0x18] sm:$0xff] }
0x22e0   :  { %3060 = vtanh.f32 %v3524_v30  ;;  %v2914_v11 = vpack.c.bf16 %v2140_v4, %v2139_v62 }
0x22e1   :  { %3062 = vpow2.f32 %v2458_v15  ;;  %v2136_v15 = vld [vmem:[%s3822_s9 + $0x8] sm:$0xff] }
0x22e2   :  { %2915 = vmatprep.subr.bf16.mxu0 %v2914_v11 }
0x22e3   :  { %2917 = vmatpush3.bf16.msra.mxu0 %v2914_v11 }
0x22e9   :  { %v3059_v13 = vpop.eup %3058 }
0x22ea   :  { %1937 = vrot.lane.b32.xlu1 %v3059_v13, %s3080_s6  ;;  %v3061_v63 = vpop.eup %3060 }
0x22eb   :  { %v3063_v25 = vpop.eup %3062 }
0x22ec   :  { %v1144_v34 = vadd.f32 1.0, %v3063_v25 }
0x22ee   :  { %3064 = vrcp.f32 %v1144_v34 }
0x22f8   :  { %v3065_v19 = vpop.eup %3064 }
0x22f9   :  { %v1148_v16 = vmul.f32 %v3065_v19, %v1060_v20 }
0x235c   :  { %v1938_v5 = vpop.permute.xlu1 %1937 }
0x235d   :  { %v1940_v51 = vmul.f32 %v3057_v61, %v1938_v5 }
0x235f   :  { %v1947_v14 = vsel %vm468_vm6, %v1940_v51, %v1838_v26 }
0x2360   :  { %1951 = vrot.lane.b32.xlu0 %v1947_v14, %s3081_s5  ;;  %v2061_v14 = vld [vmem:[%s3820_s2 + $0x30] sm:$0xff] }
0x2364   :  { %1150 = vrot.lane.b32.xlu0 %v3061_v63, %s3080_s6  ;;  %v2135_v63 = vld [vmem:[%s3822_s9] sm:$0xff] }
0x2365   :  { %v2922_v25 = vpack.c.bf16 %v2136_v15, %v2135_v63 }
0x23d2   :  { %v1952_v18 = vpop.permute.xlu0 %1951 }
0x23d3   :  { %2772 = vmatmul.mubr.msk.f32.vlgmr.msra.gmra.mrb[26].mxu1 %vm234_vm2, %v1952_v18 }
0x23d6   :  { %v1151_v7 = vpop.permute.xlu0 %1150 }
0x23d7   :  { %v1153_v10 = vmul.f32 %v3065_v19, %v1151_v7 }
0x23d9   :  { %1155 = vrot.lane.b32.xlu0 %v1153_v10, %s3080_s6 }
0x244b   :  { %v1156_v32 = vpop.permute.xlu0 %1155 }
0x244c   :  { %v1158_v30 = vadd.f32 %v1156_v32, %v1148_v16 }
0x244e   :  { %3066 = vtanh.f32 %v1158_v30 }
0x2458   :  { %v3067_v33 = vpop.eup %3066 }
0x2459   :  { %1161 = vrot.lane.b32.xlu0 %v3067_v33, %s3080_s6 }
0x245d   :  { %1942 = vrot.lane.b32.xlu0 %v1940_v51, %s3081_s5  ;;  %v2059_v51 = vld [vmem:[%s3820_s2 + $0x20] sm:$0xff] }
0x2461   :  { %2078 = vperm.xlu0 %2947, %v2056_v54  }
0x2465   :  { %1724 = vrot.lane.b32.xlu0 %v3591_v17, %s3081_s5 }
0x2469   :  { %2088 = vperm.xlu0 %2947, %v2058_v41  }
0x246d   :  { %1506 = vrot.lane.b32.xlu0 %v3552_v29, %s3081_s5  ;;  %v159_v29 = vadd.f32 %v3227_v24, %v3464_v6 }
0x2471   :  { %2098 = vperm.xlu0 %2947, %v2060_v49  }
0x2475   :  { %1279 = vrot.lane.b32.xlu0 %v3503_v8, %s3081_s5 }
0x2479   :  { %2108 = vperm.xlu0 %2947, %v2062_v38  }
0x247d   :  { %458 = vrot.lane.b32.xlu0 %v3303_v36, %s3081_s5 }
0x2481   :  { %694 = vrot.lane.b32.xlu0 %v3361_v46, %s3081_s5 }
0x2485   :  { %930 = vrot.lane.b32.xlu0 %v3417_v50, %s3081_s5 }
0x24a6   :  { %v2021_v17 = vpop.f32.mrb[26].mxu1 }
0x24a7   :  { %v2025_v22 = vadd.f32 %v2021_v17, %v159_v29  ;;  %v2773_v8 = vpop.f32.mrb[27].mxu1 }
0x24a9   :  { %3068 = vtanh.f32 %v2025_v22  ;;  %v2476_v26 = vmul.f32 -1.442695, %v2025_v22 }
0x24ab   :  { %3070 = vpow2.f32 %v2476_v26 }
0x24b3   :  { %v3069_v3 = vpop.eup %3068 }
0x24b4   :  { %2035 = vrot.lane.b32.xlu1 %v3069_v3, %s3080_s6 }
0x24b5   :  { %v3071_v47 = vpop.eup %3070 }
0x24b6   :  { %v2029_v43 = vadd.f32 1.0, %v3071_v47 }
0x24b8   :  { %3072 = vrcp.f32 %v2029_v43 }
0x24c2   :  { %v3073_v53 = vpop.eup %3072 }
0x24c3   :  { %v2033_v60 = vmul.f32 %v3073_v53, %v1948_v57 }
0x24cb   :  { %v1162_v35 = vpop.permute.xlu0 %1161 }
0x24cc   :  { %v1164_v12 = vmul.f32 %v3065_v19, %v1162_v35 }
0x24ce   :  { %1166 = vrot.lane.b32.xlu0 %v1164_v12, %s3081_s5 }
0x24cf   :  { %v1943_v36 = vpop.permute.xlu0 %1942 }
0x24d0   :  { %1946 = vst.msk [vmem:[#allocation4 + $0x8] sm:$0xff] %vm234_vm2, %v1943_v36 }
0x24e0   :  { %v3673_v46 = vpop.permute.xlu0 %2078 }
0x24e4   :  { %v1725_v50 = vpop.permute.xlu0 %1724 }
0x24e5   :  { %1728 = vst.msk [vmem:[#allocation4 + $0x18] sm:$0xff] %vm234_vm2, %v1725_v50 }
0x24e8   :  { %v3676_v24 = vpop.permute.xlu0 %2088 }
0x24ec   :  { %v1507_v6 = vpop.permute.xlu0 %1506  ;;  %v2122_v33 = vld [vmem:[#allocation4 + $0x18] sm:$0xff] }
0x24ed   :  { %1510 = vst.msk [vmem:[#allocation4 + $0x28] sm:$0xff] %vm234_vm2, %v1507_v6  ;;  %v2130_v54 = vmul.f32 %v2122_v33, %v3676_v24 }
0x24f0   :  { %v3679_v40 = vpop.permute.xlu0 %2098 }
0x24f4   :  { %v1280_v58 = vpop.permute.xlu0 %1279  ;;  %v2124_v41 = vld [vmem:[#allocation4 + $0x28] sm:$0xff] }
0x24f5   :  { %1283 = vst.msk [vmem:[#allocation4 + $0x38] sm:$0xff] %vm234_vm2, %v1280_v58  ;;  %v2132_v17 = vmul.f32 %v2124_v41, %v3679_v40 }
0x24f8   :  { %v3682_v31 = vpop.permute.xlu0 %2108 }
0x24fc   :  { %v459_v37 = vpop.permute.xlu0 %458  ;;  %v2126_v3 = vld [vmem:[#allocation4 + $0x38] sm:$0xff] }
0x24fd   :  { %462 = vst.msk [vmem:[#allocation3 + $0x8] sm:$0xff] %vm234_vm2, %v459_v37  ;;  %v2134_v50 = vmul.f32 %v2126_v3, %v3682_v31 }
0x2500   :  { %v695_v23 = vpop.permute.xlu0 %694 }
0x2501   :  { %698 = vst.msk [vmem:[#allocation3 + $0x18] sm:$0xff] %vm234_vm2, %v695_v23 }
0x2504   :  { %v931_v45 = vpop.permute.xlu0 %930  ;;  %v2064_v58 = vld [vmem:[#allocation3 + $0x8] sm:$0xff] }
0x2505   :  { %934 = vst.msk [vmem:[#allocation3 + $0x28] sm:$0xff] %vm234_vm2, %v931_v45  ;;  %v2112_v26 = vmul.f32 %v3673_v46, %v2064_v58 }
0x2508   :  { %v2066_v47 = vld [vmem:[#allocation3 + $0x18] sm:$0xff] }
0x2526   :  { %v2036_v55 = vpop.permute.xlu1 %2035 }
0x2527   :  { %v2038_v56 = vmul.f32 %v3073_v53, %v2036_v55 }
0x2529   :  { %2040 = vrot.lane.b32.xlu1 %v2038_v56, %s3080_s6  ;;  %v2114_v56 = vmul.f32 %v3676_v24, %v2066_v47  ;;  %v2493_v24 = vld [vmem:[%s3823_s11] ss:$0 sm:$0xff] }
0x2540   :  { %v1167_v48 = vpop.permute.xlu0 %1166 }
0x2541   :  { %1170 = vst.msk [vmem:[#allocation3 + $0x38] sm:$0xff] %vm234_vm2, %v1167_v48  ;;  %v2068_v48 = vld [vmem:[#allocation3 + $0x28] sm:$0xff] }
0x259b   :  { %v2041_v44 = vpop.permute.xlu1 %2040 }
0x259c   :  { %v2043_v61 = vadd.f32 %v2041_v44, %v2033_v60  ;;  %v2070_v44 = vld [vmem:[#allocation3 + $0x38] sm:$0xff] }
0x259e   :  { %3074 = vtanh.f32 %v2043_v61 }
0x25a8   :  { %v3075_v0 = vpop.eup %3074 }
0x25a9   :  { %2046 = vrot.lane.b32.xlu1 %v3075_v0, %s3080_s6 }
0x25ad   :  { %2073 = vperm.xlu1 %2946, %v2055_v2   ;;  %v2118_v2 = vmul.f32 %v3682_v31, %v2070_v44 }
0x25b1   :  { %1833 = vrot.lane.b32.xlu1 %v3610_v39, %s3081_s5  ;;  %v2141_v39 = vld [vmem:[%s3821_s10 + $0x10] sm:$0xff] }
0x25b2   :  { %v2918_v13 = vpack.c.bf16 %v2142_v27, %v2141_v39 }
0x25b4   :  { %2919 = vmatprep.subr.bf16.mxu0 %v2918_v13 }
0x25b5   :  { %2083 = vperm.xlu1 %2946, %v2057_v28   ;;  %2921 = vmatpush3.bf16.msra.mxu0 %v2918_v13 }
0x25b6   :  { %2923 = vmatprep.subr.bf16.mxu0 %v2922_v25 }
0x25b9   :  { %1615 = vrot.lane.b32.xlu1 %v3572_v52, %s3081_s5 }
0x261b   :  { %v2047_v52 = vpop.permute.xlu1 %2046 }
0x261c   :  { %v2049_v5 = vmul.f32 %v3073_v53, %v2047_v52 }
0x261e   :  { %2051 = vrot.lane.b32.xlu1 %v2049_v5, %s3081_s5 }
0x2622   :  { %2093 = vperm.xlu1 %2946, %v2059_v51  }
0x2626   :  { %1397 = vrot.lane.b32.xlu1 %v3532_v42, %s3081_s5 }
0x262a   :  { %2103 = vperm.xlu1 %2946, %v2061_v14  }
0x262c   :  { %v2074_v34 = vpop.permute.xlu1 %2073 }
0x262e   :  { %338 = vrot.lane.b32.xlu1 %v3275_v59, %s3081_s5  ;;  %v2137_v59 = vld [vmem:[%s3822_s9 + $0x10] sm:$0xff] }
0x2630   :  { %v1834_v42 = vpop.permute.xlu1 %1833 }
0x2631   :  { %1837 = vst.msk [vmem:[#allocation4 + $0x10] sm:$0xff] %vm234_vm2, %v1834_v42 }
0x2632   :  { %576 = vrot.lane.b32.xlu1 %v3335_v1, %s3081_s5  ;;  %v2138_v1 = vld [vmem:[%s3822_s9 + $0x18] sm:$0xff] }
0x2633   :  { %v2926_v30 = vpack.c.bf16 %v2138_v1, %v2137_v59 }
0x2634   :  { %v2084_v18 = vpop.permute.xlu1 %2083 }
0x2636   :  { %812 = vrot.lane.b32.xlu1 %v3386_v9, %s3081_s5  ;;  %v2120_v9 = vld [vmem:[#allocation4 + $0x8] sm:$0xff] }
0x2637   :  { %v2128_v32 = vmul.f32 %v2120_v9, %v3673_v46  ;;  %v2116_v46 = vmul.f32 %v3679_v40, %v2068_v48 }
0x2638   :  { %v1616_v19 = vpop.permute.xlu1 %1615  ;;  %v2121_v10 = vld [vmem:[#allocation4 + $0x10] sm:$0xff] }
0x2639   :  { %1619 = vst.msk [vmem:[#allocation4 + $0x20] sm:$0xff] %vm234_vm2, %v1616_v19 }
0x263a   :  { %1048 = vrot.lane.b32.xlu1 %v3495_v21, %s3081_s5  ;;  %v2129_v21 = vmul.f32 %v2121_v10, %v2084_v18 }
0x2640   :  { %v2123_v49 = vld [vmem:[#allocation4 + $0x20] sm:$0xff] }
0x2690   :  { %v2052_v7 = vpop.permute.xlu1 %2051 }
0x2691   :  { %2054 = vst.msk [vmem:[#allocation4] sm:$0xff] %vm234_vm2, %v2052_v7 }
0x2698   :  { %v2119_v20 = vld [vmem:[#allocation4] sm:$0xff] }
0x2699   :  { %v2127_v16 = vmul.f32 %v2119_v20, %v2074_v34 }
0x269b   :  { %2782 = vmatprep.mubr.msk.f32.mxu0 %vm234_vm2, %v2127_v16 }
0x269c   :  { %2783 = vmatmul.mubr.msk.f32.vlgmr.msra.gmra.mrb[20].mxu0 %vm234_vm2, %v2128_v32 }
0x269d   :  { %2785 = vmatprep.mubr.msk.f32.mxu0 %vm234_vm2, %v2129_v21  ;;  %2925 = vmatpush3.bf16.msra.mxu0 %v2922_v25 }
0x269e   :  { %2927 = vmatprep.subr.bf16.mxu0 %v2926_v30 }
0x26a0   :  { %2786 = vmatmul.mubr.msk.f32.gmra.mrb[22].mxu0 %vm234_vm2, %v2130_v54 }
0x26a1   :  { %v2094_v38 = vpop.permute.xlu1 %2093  ;;  %2929 = vmatpush3.bf16.msra.mxu0 %v2926_v30 }
0x26a2   :  { %v2131_v29 = vmul.f32 %v2123_v49, %v2094_v38 }
0x26a4   :  { %2788 = vmatprep.mubr.msk.f32.mxu0 %vm234_vm2, %v2131_v29 }
0x26a5   :  { %2789 = vmatmul.mubr.msk.f32.gmra.mrb[24].mxu0 %vm234_vm2, %v2132_v17  ;;  %v1398_v22 = vpop.permute.xlu1 %1397 }
0x26a6   :  { %1401 = vst.msk [vmem:[#allocation4 + $0x30] sm:$0xff] %vm234_vm2, %v1398_v22 }
0x26a9   :  { %v2104_v8 = vpop.permute.xlu1 %2103 }
0x26ad   :  { %v2125_v35 = vld [vmem:[#allocation4 + $0x30] sm:$0xff]  ;;  %v339_v12 = vpop.permute.xlu1 %338 }
0x26ae   :  { %v2133_v36 = vmul.f32 %v2125_v35, %v2104_v8  ;;  %341 = vst.msk [vmem:[#allocation3] sm:$0xff] %vm234_vm2, %v339_v12 }
0x26b0   :  { %2791 = vmatprep.mubr.msk.f32.mxu0 %vm234_vm2, %v2133_v36 }
0x26b1   :  { %2792 = vmatmul.mubr.msk.f32.gmra.mrb[26].mxu0 %vm234_vm2, %v2134_v50  ;;  %v577_v6 = vpop.permute.xlu1 %576 }
0x26b2   :  { %580 = vst.msk [vmem:[#allocation3 + $0x10] sm:$0xff] %vm234_vm2, %v577_v6 }
0x26b5   :  { %v813_v37 = vpop.permute.xlu1 %812  ;;  %v2063_v23 = vld [vmem:[#allocation3] sm:$0xff] }
0x26b6   :  { %816 = vst.msk [vmem:[#allocation3 + $0x20] sm:$0xff] %vm234_vm2, %v813_v37  ;;  %v2111_v45 = vmul.f32 %v2074_v34, %v2063_v23 }
0x26b8   :  { %2802 = vmatprep.mubr.msk.f32.mxu0 %vm234_vm2, %v2111_v45 }
0x26b9   :  { %2803 = vmatmul.mubr.msk.f32.vlgmr.msra.gmra.mrb[20].mxu0 %vm234_vm2, %v2112_v26  ;;  %v1049_v43 = vpop.permute.xlu1 %1048  ;;  %v2065_v53 = vld [vmem:[#allocation3 + $0x10] sm:$0xff] }
0x26ba   :  { %1052 = vst.msk [vmem:[#allocation3 + $0x30] sm:$0xff] %vm234_vm2, %v1049_v43  ;;  %v2113_v55 = vmul.f32 %v2084_v18, %v2065_v53 }
0x26bc   :  { %2805 = vmatprep.mubr.msk.f32.mxu0 %vm234_vm2, %v2113_v55 }
0x26bd   :  { %2806 = vmatmul.mubr.msk.f32.gmra.mrb[22].mxu0 %vm234_vm2, %v2114_v56  ;;  %v2067_v57 = vld [vmem:[#allocation3 + $0x20] sm:$0xff] }
0x26be   :  { %v2115_v60 = vmul.f32 %v2094_v38, %v2067_v57 }
0x26c0   :  { %2808 = vmatprep.mubr.msk.f32.mxu0 %vm234_vm2, %v2115_v60 }
0x26c1   :  { %2809 = vmatmul.mubr.msk.f32.gmra.mrb[24].mxu0 %vm234_vm2, %v2116_v46  ;;  %v2069_v61 = vld [vmem:[#allocation3 + $0x30] sm:$0xff] }
0x26c2   :  { %v2117_v0 = vmul.f32 %v2104_v8, %v2069_v61 }
0x26c4   :  { %2811 = vmatprep.mubr.msk.f32.mxu0 %vm234_vm2, %v2117_v0 }
0x26c5   :  { %2812 = vmatmul.mubr.msk.f32.gmra.mrb[26].mxu0 %vm234_vm2, %v2118_v2 }
0x278c   :  { %v2804_v28 = vpop.f32.mrb[20].mxu0 }
0x278d   :  { %v2409_v62 = vadd.f32 %v2804_v28, %v2493_v24  ;;  %v2362_v40 = vpop.f32.mrb[21].mxu0 }
0x278e   :  { %v2408_v4 = vadd.f32 %v2493_v24, %v2362_v40 }
0x278f   :  { %2417 = vst.msk [vmem:[%s3824_s12 + $0x8] sm:$0xff] %vm65_vm0, %v2409_v62 }
0x2790   :  { %2416 = vst.msk [vmem:[%s3824_s12] sm:$0xff] %vm65_vm0, %v2408_v4  ;;  %v2807_v31 = vpop.f32.mrb[22].mxu0 }
0x2791   :  { %v2411_v39 = vadd.f32 %v2807_v31, %v2493_v24  ;;  %v2372_v11 = vpop.f32.mrb[23].mxu0 }
0x2792   :  { %v2410_v27 = vadd.f32 %v2493_v24, %v2372_v11 }
0x2793   :  { %2419 = vst.msk [vmem:[%s3824_s12 + $0x18] sm:$0xff] %vm65_vm0, %v2411_v39 }
0x2794   :  { %2418 = vst.msk [vmem:[%s3824_s12 + $0x10] sm:$0xff] %vm65_vm0, %v2410_v27  ;;  %v2810_v13 = vpop.f32.mrb[24].mxu0 }
0x2795   :  { %v2413_v52 = vadd.f32 %v2810_v13, %v2493_v24  ;;  %v2382_v5 = vpop.f32.mrb[25].mxu0 }
0x2796   :  { %v2412_v51 = vadd.f32 %v2493_v24, %v2382_v5 }
0x2797   :  { %2421 = vst.msk [vmem:[%s3824_s12 + $0x28] sm:$0xff] %vm65_vm0, %v2413_v52 }
0x2798   :  { %2420 = vst.msk [vmem:[%s3824_s12 + $0x20] sm:$0xff] %vm65_vm0, %v2412_v51  ;;  %v2813_v14 = vpop.f32.mrb[26].mxu0 }
0x2799   :  { %v2415_v63 = vadd.f32 %v2813_v14, %v2493_v24  ;;  %v2392_v15 = vpop.f32.mrb[27].mxu0 }
0x279a   :  { %v2414_v25 = vadd.f32 %v2493_v24, %v2392_v15 }
0x279b   :  { %2423 = vst.msk [vmem:[%s3824_s12 + $0x38] sm:$0xff] %vm65_vm0, %v2415_v63 }
0x279c   :  { %2422 = vst.msk [vmem:[%s3824_s12 + $0x30] sm:$0xff] %vm65_vm0, %v2414_v25 }

</bundles_post_ra>
